<compile_context>
chip_gen: v7x
topology: tpu7x:2x2x1
jax: 0.10.0
libtpu: 0.0.40
codegen_flags: <defaults>
</compile_context>

<pallas_src>
import math

import jax
import jax.numpy as jnp
from jax import lax
from jax.experimental import pallas as pl
from jax.experimental.pallas import tpu as pltpu

EPS = 1e-5   # PyTorch BatchNorm default eps


# ---------------------------------------------------------------------------
# The single fused kernel.  All activations are lane-dense (B*H, W*C) f32
# (lane l = w*C + c), so every load/store is a full 128-lane vector op.
# ---------------------------------------------------------------------------
def sk_fused_kernel(x_ref, y_ref, w1_ref, g1_ref, b1_ref,
                    em_ref, emts_ref, eo_ref, eots_ref, r_ref, rt_ref,
                    wgap_ref, gfc_ref, bfc_ref, wfd_ref, bfd_ref,
                    w2_ref, g2_ref, b2_ref, mtop_ref, mbot_ref,
                    y_out_ref, x_out_ref):
    # ---- conv1: 1x1 conv (block-diagonal bf16 matmul) + BN (batch stats, one pass) ----
    z1 = jnp.dot(x_ref[...], w1_ref[...], preferred_element_type=jnp.float32)   # (BH, WCm)
    s12 = jnp.concatenate([jnp.sum(z1, axis=0, keepdims=True),
                           jnp.sum(z1 * z1, axis=0, keepdims=True)], axis=0)    # (2, WCm)
    st = jnp.dot(s12, emts_ref[...], preferred_element_type=jnp.float32)        # (2, Cmid) = E[x],E[x^2]
    mean_c = st[0:1]
    var_c = jnp.maximum(st[1:2] - mean_c * mean_c, 0.0)
    ms = jnp.concatenate([mean_c, lax.rsqrt(var_c + EPS)], axis=0)              # (2, Cmid)
    ms_l = jnp.dot(ms, em_ref[...], preferred_element_type=jnp.float32)         # (2, WCm)
    x1 = g1_ref[...] * (z1 - ms_l[0:1]) * ms_l[1:2] + b1_ref[...]               # (BH, WCm)

    # ---- SK attention (B > 1 path: fc = conv + BN + ReLU) ----
    yb = y_ref[...]
    su = x1 + yb                                                                # sum of branches
    rsum = jnp.dot(rt_ref[...], su, preferred_element_type=jnp.float32)         # (B, WCm)
    zf = jnp.dot(rsum, wgap_ref[...], preferred_element_type=jnp.float32)       # (B, L): GAP folded in
    mu = jnp.mean(zf, axis=0, keepdims=True)
    var = jnp.maximum(jnp.mean(zf * zf, axis=0, keepdims=True) - mu * mu, 0.0)
    zf = gfc_ref[...] * (zf - mu) * lax.rsqrt(var + EPS) + bfc_ref[...]
    zf = jnp.maximum(zf, 0.0)

    # 2-way softmax: att0 = exp(a0)/(exp(a0)+exp(a1)) = sigmoid(a0 - a1); att1 = 1 - att0
    d = jnp.dot(zf, wfd_ref[...], preferred_element_type=jnp.float32) + bfd_ref[...]  # (B, Cmid)
    att0 = 1.0 / (1.0 + jnp.exp(-d))
    att0_l = jnp.dot(att0, em_ref[...], preferred_element_type=jnp.float32)     # (B, WCm)
    att0_r = jnp.dot(r_ref[...], att0_l, preferred_element_type=jnp.float32)    # (BH, WCm)
    xf = yb + att0_r * (x1 - yb)                                                # att0*x1 + (1-att0)*y
    x_out_ref[...] = xf

    # ---- conv2: 3x3, pad=1 via banded block matmuls on UNSHIFTED xf + shifted combine ----
    xf_b = xf.astype(jnp.bfloat16)
    q0 = jnp.dot(xf_b, w2_ref[0], preferred_element_type=jnp.float32)           # tap kh = -1
    q1 = jnp.dot(xf_b, w2_ref[1], preferred_element_type=jnp.float32)           # tap kh =  0
    q2 = jnp.dot(xf_b, w2_ref[2], preferred_element_type=jnp.float32)           # tap kh = +1
    zrow = jnp.zeros((1, q0.shape[1]), jnp.float32)
    q0s = jnp.concatenate([zrow, q0[:-1]], axis=0)      # out[r] <- q0[r-1]
    q2s = jnp.concatenate([q2[1:], zrow], axis=0)       # out[r] <- q2[r+1]
    # precomputed per-row masks zero the per-batch top/bottom boundary rows
    acc = q1 + q0s * mtop_ref[...] + q2s * mbot_ref[...]                        # (BH, WCo)

    t12 = jnp.concatenate([jnp.sum(acc, axis=0, keepdims=True),
                           jnp.sum(acc * acc, axis=0, keepdims=True)], axis=0)  # (2, WCo)
    st2 = jnp.dot(t12, eots_ref[...], preferred_element_type=jnp.float32)       # (2, Cout)
    mo_c = st2[0:1]
    vo_c = jnp.maximum(st2[1:2] - mo_c * mo_c, 0.0)
    ms2 = jnp.concatenate([mo_c, lax.rsqrt(vo_c + EPS)], axis=0)                # (2, Cout)
    ms2_l = jnp.dot(ms2, eo_ref[...], preferred_element_type=jnp.float32)       # (2, WCo)
    y_out_ref[...] = g2_ref[...] * (acc - ms2_l[0:1]) * ms2_l[1:2] + b2_ref[...]


# ---------------------------------------------------------------------------
# Wrapper-side layout plumbing (pure XLA): parameter repacking, nearest resize,
# NCHW <-> lane-dense (B*H, W*C) transposes.
# ---------------------------------------------------------------------------
def nearest_resize_nhwc(y, H, W):
    # Exact PyTorch F.interpolate(mode='nearest') rule: src = floor(dst * in/out)
    B, h, w, C = y.shape
    ri = (jnp.arange(H) * h) // H
    ci = (jnp.arange(W) * w) // W
    return y[:, ri][:, :, ci]


def make_kernel_params(w1_t, g1, b1, wfc_t, gfc, bfc, wf0_t, bf0, wf1_t, bf1,
                       w2_t, g2, b2, *, B, H, W):
    """Repack PyTorch-layout weights into the fused kernel's lane-dense layouts."""
    Cmid, Cin = w1_t.shape[0], w1_t.shape[1]
    Cout = w2_t.shape[0]
    L = wfc_t.shape[0]

    def block_banded(w_tap, dw):
        # (Ci, Co) tap -> (W*Ci, W*Co): block w_tap at block-row (c+dw), block-col c.
        sel = jnp.eye(W, k=-dw, dtype=jnp.float32)          # sel[r, c] = 1 iff r == c + dw
        Ci, Co = w_tap.shape
        return jnp.einsum("rc,io->rico", sel, w_tap).reshape(W * Ci, W * Co)

    w1 = w1_t[:, :, 0, 0].T.astype(jnp.float32)             # (Cin, Cmid)
    w1blk = block_banded(w1, 0).astype(jnp.bfloat16)        # (W*Cin, W*Cmid), bf16 MXU operand

    w2rows = []
    for kh in range(3):
        mrow = jnp.zeros((W * Cmid, W * Cout), jnp.float32)
        for kw in range(3):
            w_tap = w2_t[:, :, kh, kw].T                     # (Cmid, Cout)
            mrow = mrow + block_banded(w_tap, kw - 1)        # fold kw shift + zero pad
        w2rows.append(mrow)
    w2rows = jnp.stack(w2rows, axis=0).astype(jnp.bfloat16)  # (3, W*Cmid, W*Cout)

    em = jnp.tile(jnp.eye(Cmid, dtype=jnp.float32), (1, W))    # (Cmid, W*Cmid)
    eo = jnp.tile(jnp.eye(Cout, dtype=jnp.float32), (1, W))    # (Cout, W*Cout)
    r = jnp.repeat(jnp.eye(B, dtype=jnp.float32), H, axis=0)   # (B*H, B)
    inv_npix = 1.0 / float(B * H * W)

    wfc = wfc_t[:, :, 0, 0].T                                  # (Cmid, L)
    wgap = (em.T @ wfc) / float(H * W)                         # (W*Cmid, L): GAP folded in
    wfd = (wf0_t[:, :, 0, 0] - wf1_t[:, :, 0, 0]).T            # (L, Cmid): a0 - a1 head
    bfd = (bf0 - bf1).reshape(1, Cmid)

    hh = jnp.arange(B * H) % H                                  # per-batch row index
    mtop = (hh != 0).astype(jnp.float32).reshape(B * H, 1)      # kill kh=-1 rows at h==0
    mbot = (hh != H - 1).astype(jnp.float32).reshape(B * H, 1)  # kill kh=+1 rows at h==H-1

    return dict(
        w1blk=w1blk,
        g1t=jnp.tile(g1.reshape(1, -1), (1, W)),
        b1t=jnp.tile(b1.reshape(1, -1), (1, W)),
        em=em, emts=em.T * inv_npix, eo=eo, eots=eo.T * inv_npix,
        r=r, rt=r.T,
        wgap=wgap, gfc=gfc.reshape(1, L), bfc=bfc.reshape(1, L),
        wfd=wfd, bfd=bfd,
        w2rows=w2rows,
        g2t=jnp.tile(g2.reshape(1, -1), (1, W)),
        b2t=jnp.tile(b2.reshape(1, -1), (1, W)),
        mtop=mtop, mbot=mbot,
    )


def sk_forward(x_nchw, y_nchw, kp):
    B, Cin, H, W = x_nchw.shape
    Cmid = y_nchw.shape[1]
    Cout = kp["g2t"].shape[1] // W

    x2d = jnp.transpose(x_nchw, (0, 2, 3, 1)).reshape(B * H, W * Cin).astype(jnp.bfloat16)
    y_nhwc = jnp.transpose(y_nchw, (0, 2, 3, 1))
    y2d = nearest_resize_nhwc(y_nhwc, H, W).reshape(B * H, W * Cmid)

    inputs = (x2d, y2d, kp["w1blk"], kp["g1t"], kp["b1t"],
              kp["em"], kp["emts"], kp["eo"], kp["eots"], kp["r"], kp["rt"],
              kp["wgap"], kp["gfc"], kp["bfc"], kp["wfd"], kp["bfd"],
              kp["w2rows"], kp["g2t"], kp["b2t"], kp["mtop"], kp["mbot"])

    y2d_out, x2d_out = pl.pallas_call(
        sk_fused_kernel,
        grid=(1,),
        in_specs=[pl.BlockSpec(a.shape, lambda i, n=a.ndim: (0,) * n) for a in inputs],
        out_specs=(pl.BlockSpec((B * H, W * Cout), lambda i: (0, 0)),
                   pl.BlockSpec((B * H, W * Cmid), lambda i: (0, 0))),
        out_shape=(jax.ShapeDtypeStruct((B * H, W * Cout), jnp.float32),
                   jax.ShapeDtypeStruct((B * H, W * Cmid), jnp.float32)),
        compiler_params=pltpu.CompilerParams(dimension_semantics=("arbitrary",)),
    )(*inputs)

    y_out = jnp.transpose(y2d_out.reshape(B, H, W, Cout), (0, 3, 1, 2))
    x_out = jnp.transpose(x2d_out.reshape(B, H, W, Cmid), (0, 3, 1, 2))
    return y_out, x_out


# ---------------------------------------------------------------------------
# Plain-JAX reference (train-mode BN, B > 1 path) for the correctness check.
# Params / x are pre-rounded to bf16-representable values in __main__; the only
# in-kernel quantization point (xf -> bf16 before conv2) is mirrored here so the
# comparison can be tight.
# ---------------------------------------------------------------------------
def sk_reference(x_nchw, y_nchw, raw):
    (w1_t, g1, b1, wfc_t, gfc, bfc, wf0_t, bf0, wf1_t, bf1, w2_t, g2, b2) = raw
    x = jnp.transpose(x_nchw, (0, 2, 3, 1))
    B, H, W, _ = x.shape

    z = jnp.einsum("bhwi,oi->bhwo", x, w1_t[:, :, 0, 0])
    mu = jnp.mean(z, axis=(0, 1, 2))
    var = jnp.mean((z - mu) ** 2, axis=(0, 1, 2))
    x1 = g1 * (z - mu) / jnp.sqrt(var + EPS) + b1

    yr = nearest_resize_nhwc(jnp.transpose(y_nchw, (0, 2, 3, 1)), H, W)
    s = x1 + yr
    gap = jnp.mean(s, axis=(1, 2))                           # (B, Cmid)
    zf = gap @ wfc_t[:, :, 0, 0].T                           # (B, L)
    mu2 = jnp.mean(zf, axis=0)
    var2 = jnp.mean((zf - mu2) ** 2, axis=0)
    zf = gfc * (zf - mu2) / jnp.sqrt(var2 + EPS) + bfc
    zf = jnp.maximum(zf, 0.0)
    a0 = zf @ wf0_t[:, :, 0, 0].T + bf0
    a1 = zf @ wf1_t[:, :, 0, 0].T + bf1
    att = jax.nn.softmax(jnp.stack([a0, a1], axis=1), axis=1)
    xf = att[:, 0][:, None, None, :] * x1 + att[:, 1][:, None, None, :] * yr

    xf_q = xf.astype(jnp.bfloat16).astype(jnp.float32)       # mirror in-kernel bf16 MXU operand
    z2 = lax.conv_general_dilated(
        xf_q, jnp.transpose(w2_t, (2, 3, 1, 0)), window_strides=(1, 1), padding="SAME",
        dimension_numbers=("NHWC", "HWIO", "NHWC"))
    mu3 = jnp.mean(z2, axis=(0, 1, 2))
    var3 = jnp.mean((z2 - mu3) ** 2, axis=(0, 1, 2))
    y2 = g2 * (z2 - mu3) / jnp.sqrt(var3 + EPS) + b2
    return jnp.transpose(y2, (0, 3, 1, 2)), jnp.transpose(xf, (0, 3, 1, 2))


if __name__ == "__main__":
    # Module config: SK(in_channel=4, mid_channel=8, out_channel=8, fuse=True)
    B, Cin, Cmid, Cout = 2, 4, 8, 8
    H = W = 16
    Hy = Wy = 8
    L = max(Cmid // 16, 32)   # len = max(mid_channel // reduce, 32) = 32

    key = jax.random.PRNGKey(0)
    ks = jax.random.split(key, 9)

    def u(k, shape, bound):
        return jax.random.uniform(k, shape, jnp.float32, -bound, bound)

    def q(t):  # bf16-representable values (bf16 MXU operands then incur no extra rounding)
        return t.astype(jnp.bfloat16).astype(jnp.float32)

    # Deterministic parameter init (same shapes / distributions as the PyTorch module).
    w1_t = q(u(ks[0], (Cmid, Cin, 1, 1), math.sqrt(3.0 / Cin)))            # conv1, kaiming a=1
    w2_t = q(u(ks[1], (Cout, Cmid, 3, 3), math.sqrt(3.0 / (Cmid * 9))))    # conv2, kaiming a=1
    wfc_t = u(ks[2], (L, Cmid, 1, 1), 1.0 / math.sqrt(Cmid))               # fc conv, no bias
    wf0_t = u(ks[3], (Cmid, L, 1, 1), 1.0 / math.sqrt(L))                  # fcs[0] conv
    bf0 = u(ks[4], (Cmid,), 1.0 / math.sqrt(L))                            # fcs[0] bias
    wf1_t = u(ks[5], (Cmid, L, 1, 1), 1.0 / math.sqrt(L))                  # fcs[1] conv
    bf1 = u(ks[6], (Cmid,), 1.0 / math.sqrt(L))                            # fcs[1] bias

    # BatchNorm affine params (PyTorch init: weight=1, bias=0)
    g1, b1 = jnp.ones((Cmid,)), jnp.zeros((Cmid,))
    gfc, bfc = jnp.ones((L,)), jnp.zeros((L,))
    g2, b2 = jnp.ones((Cout,)), jnp.zeros((Cout,))

    raw = (w1_t, g1, b1, wfc_t, gfc, bfc, wf0_t, bf0, wf1_t, bf1, w2_t, g2, b2)
    kparams = make_kernel_params(*raw, B=B, H=H, W=W)

    # Inputs (NCHW, like PyTorch): x is the main feature, y is the lateral feature.
    x = q(jax.random.normal(ks[7], (B, Cin, H, W), jnp.float32))
    y = jax.random.normal(ks[8], (B, Cmid, Hy, Wy), jnp.float32)

    fwd = jax.jit(sk_forward)
    out_y, out_x = fwd(x, y, kparams)
    jax.block_until_ready((out_y, out_x))

    assert out_y.shape == (B, Cout, H, W)
    assert out_x.shape == (B, Cmid, H, W)
    assert bool(jnp.all(jnp.isfinite(out_y))) and bool(jnp.all(jnp.isfinite(out_x)))

    # Correctness check vs. plain-JAX reference (exact softmax / rsqrt, same bf16 operands).
    ref_y, ref_x = sk_reference(x, y, raw)
    err_y = float(jnp.max(jnp.abs(out_y - ref_y)))
    err_x = float(jnp.max(jnp.abs(out_x - ref_x)))
    assert err_y < 2e-2 and err_x < 1e-2, (err_y, err_x)

    print("KERNEL_OK")
</pallas_src>

<mosaic_0001>
module attributes {stable_mosaic.version = 11 : i64} {
  func.func @sk_fused_kernel(%arg0: i32, %arg1: memref<32x64xbf16, #tpu.memory_space<vmem>>, %arg2: memref<32x128xf32, #tpu.memory_space<vmem>>, %arg3: memref<64x128xbf16, #tpu.memory_space<vmem>>, %arg4: memref<1x128xf32, #tpu.memory_space<vmem>>, %arg5: memref<1x128xf32, #tpu.memory_space<vmem>>, %arg6: memref<8x128xf32, #tpu.memory_space<vmem>>, %arg7: memref<128x8xf32, #tpu.memory_space<vmem>>, %arg8: memref<8x128xf32, #tpu.memory_space<vmem>>, %arg9: memref<128x8xf32, #tpu.memory_space<vmem>>, %arg10: memref<32x2xf32, #tpu.memory_space<vmem>>, %arg11: memref<2x32xf32, #tpu.memory_space<vmem>>, %arg12: memref<128x32xf32, #tpu.memory_space<vmem>>, %arg13: memref<1x32xf32, #tpu.memory_space<vmem>>, %arg14: memref<1x32xf32, #tpu.memory_space<vmem>>, %arg15: memref<32x8xf32, #tpu.memory_space<vmem>>, %arg16: memref<1x8xf32, #tpu.memory_space<vmem>>, %arg17: memref<3x128x128xbf16, #tpu.memory_space<vmem>>, %arg18: memref<1x128xf32, #tpu.memory_space<vmem>>, %arg19: memref<1x128xf32, #tpu.memory_space<vmem>>, %arg20: memref<32x1xf32, #tpu.memory_space<vmem>>, %arg21: memref<32x1xf32, #tpu.memory_space<vmem>>, %arg22: memref<32x128xf32, #tpu.memory_space<vmem>>, %arg23: memref<32x128xf32, #tpu.memory_space<vmem>>) attributes {dimension_semantics = [#tpu.dimension_semantics<arbitrary>], iteration_bounds = array<i64: 1>, scalar_prefetch = 0 : i64, scratch_operands = 0 : i64, tpu.core_type = #tpu.core_type<tc>, window_params = [{pipeline_mode = #tpu.pipeline_mode<synchronous>, transform_indices = @transform_0, window_bounds = array<i64: 32, 64>}, {pipeline_mode = #tpu.pipeline_mode<synchronous>, transform_indices = @transform_1, window_bounds = array<i64: 32, 128>}, {pipeline_mode = #tpu.pipeline_mode<synchronous>, transform_indices = @transform_2, window_bounds = array<i64: 64, 128>}, {pipeline_mode = #tpu.pipeline_mode<synchronous>, transform_indices = @transform_3, window_bounds = array<i64: 1, 128>}, {pipeline_mode = #tpu.pipeline_mode<synchronous>, transform_indices = @transform_4, window_bounds = array<i64: 1, 128>}, {pipeline_mode = #tpu.pipeline_mode<synchronous>, transform_indices = @transform_5, window_bounds = array<i64: 8, 128>}, {pipeline_mode = #tpu.pipeline_mode<synchronous>, transform_indices = @transform_6, window_bounds = array<i64: 128, 8>}, {pipeline_mode = #tpu.pipeline_mode<synchronous>, transform_indices = @transform_7, window_bounds = array<i64: 8, 128>}, {pipeline_mode = #tpu.pipeline_mode<synchronous>, transform_indices = @transform_8, window_bounds = array<i64: 128, 8>}, {pipeline_mode = #tpu.pipeline_mode<synchronous>, transform_indices = @transform_9, window_bounds = array<i64: 32, 2>}, {pipeline_mode = #tpu.pipeline_mode<synchronous>, transform_indices = @transform_10, window_bounds = array<i64: 2, 32>}, {pipeline_mode = #tpu.pipeline_mode<synchronous>, transform_indices = @transform_11, window_bounds = array<i64: 128, 32>}, {pipeline_mode = #tpu.pipeline_mode<synchronous>, transform_indices = @transform_12, window_bounds = array<i64: 1, 32>}, {pipeline_mode = #tpu.pipeline_mode<synchronous>, transform_indices = @transform_13, window_bounds = array<i64: 1, 32>}, {pipeline_mode = #tpu.pipeline_mode<synchronous>, transform_indices = @transform_14, window_bounds = array<i64: 32, 8>}, {pipeline_mode = #tpu.pipeline_mode<synchronous>, transform_indices = @transform_15, window_bounds = array<i64: 1, 8>}, {pipeline_mode = #tpu.pipeline_mode<synchronous>, transform_indices = @transform_16, window_bounds = array<i64: 3, 128, 128>}, {pipeline_mode = #tpu.pipeline_mode<synchronous>, transform_indices = @transform_17, window_bounds = array<i64: 1, 128>}, {pipeline_mode = #tpu.pipeline_mode<synchronous>, transform_indices = @transform_18, window_bounds = array<i64: 1, 128>}, {pipeline_mode = #tpu.pipeline_mode<synchronous>, transform_indices = @transform_19, window_bounds = array<i64: 32, 1>}, {pipeline_mode = #tpu.pipeline_mode<synchronous>, transform_indices = @transform_20, window_bounds = array<i64: 32, 1>}, {pipeline_mode = #tpu.pipeline_mode<synchronous>, transform_indices = @transform_21, window_bounds = array<i64: 32, 128>}, {pipeline_mode = #tpu.pipeline_mode<synchronous>, transform_indices = @transform_22, window_bounds = array<i64: 32, 128>}]} {
    %c0 = arith.constant 0 : index
    %c0_0 = arith.constant 0 : index
    %0 = vector.load %arg1[%c0, %c0_0] : memref<32x64xbf16, #tpu.memory_space<vmem>>, vector<32x64xbf16>
    %c0_1 = arith.constant 0 : index
    %c0_2 = arith.constant 0 : index
    %1 = vector.load %arg3[%c0_1, %c0_2] : memref<64x128xbf16, #tpu.memory_space<vmem>>, vector<64x128xbf16>
    %cst = arith.constant dense<0.000000e+00> : vector<32x128xf32>
    %2 = tpu.matmul %0, %1, %cst {dimension_numbers = #tpu.dot_dimension_numbers<[1], [0], [0], [1], [0, 0, 1, 1], [], []>} : vector<32x64xbf16>, vector<64x128xbf16>, vector<32x128xf32> -> vector<32x128xf32>
    %cst_3 = arith.constant dense<0.000000e+00> : vector<128xf32>
    %3 = vector.multi_reduction <add>, %2, %cst_3 [0] : vector<32x128xf32> to vector<128xf32>
    %4 = vector.shape_cast %3 : vector<128xf32> to vector<1x128xf32>
    %5 = arith.mulf %2, %2 : vector<32x128xf32>
    %cst_4 = arith.constant dense<0.000000e+00> : vector<128xf32>
    %6 = vector.multi_reduction <add>, %5, %cst_4 [0] : vector<32x128xf32> to vector<128xf32>
    %7 = vector.shape_cast %6 : vector<128xf32> to vector<1x128xf32>
    %8 = tpu.concatenate %4, %7 in 0 : vector<1x128xf32>, vector<1x128xf32> -> vector<2x128xf32>
    %c0_5 = arith.constant 0 : index
    %c0_6 = arith.constant 0 : index
    %9 = vector.load %arg7[%c0_5, %c0_6] : memref<128x8xf32, #tpu.memory_space<vmem>>, vector<128x8xf32>
    %cst_7 = arith.constant dense<0.000000e+00> : vector<2x8xf32>
    %10 = tpu.matmul %8, %9, %cst_7 {dimension_numbers = #tpu.dot_dimension_numbers<[1], [0], [0], [1], [0, 0, 1, 1], [], []>} : vector<2x128xf32>, vector<128x8xf32>, vector<2x8xf32> -> vector<2x8xf32>
    %11 = vector.extract_strided_slice %10 {offsets = [0, 0], sizes = [1, 8], strides = [1, 1]} : vector<2x8xf32> to vector<1x8xf32>
    %12 = vector.extract_strided_slice %10 {offsets = [1, 0], sizes = [1, 8], strides = [1, 1]} : vector<2x8xf32> to vector<1x8xf32>
    %13 = arith.mulf %11, %11 : vector<1x8xf32>
    %14 = arith.subf %12, %13 : vector<1x8xf32>
    %cst_8 = arith.constant 0.000000e+00 : f32
    %15 = vector.broadcast %cst_8 : f32 to vector<1x8xf32>
    %16 = arith.maximumf %14, %15 : vector<1x8xf32>
    %cst_9 = arith.constant 9.99999974E-6 : f32
    %17 = vector.broadcast %cst_9 : f32 to vector<1x8xf32>
    %18 = arith.addf %16, %17 : vector<1x8xf32>
    %19 = math.rsqrt %18 : vector<1x8xf32>
    %20 = tpu.concatenate %11, %19 in 0 : vector<1x8xf32>, vector<1x8xf32> -> vector<2x8xf32>
    %c0_10 = arith.constant 0 : index
    %c0_11 = arith.constant 0 : index
    %21 = vector.load %arg6[%c0_10, %c0_11] : memref<8x128xf32, #tpu.memory_space<vmem>>, vector<8x128xf32>
    %cst_12 = arith.constant dense<0.000000e+00> : vector<2x128xf32>
    %22 = tpu.matmul %20, %21, %cst_12 {dimension_numbers = #tpu.dot_dimension_numbers<[1], [0], [0], [1], [0, 0, 1, 1], [], []>} : vector<2x8xf32>, vector<8x128xf32>, vector<2x128xf32> -> vector<2x128xf32>
    %c0_13 = arith.constant 0 : index
    %c0_14 = arith.constant 0 : index
    %23 = vector.load %arg4[%c0_13, %c0_14] : memref<1x128xf32, #tpu.memory_space<vmem>>, vector<1x128xf32>
    %24 = vector.extract_strided_slice %22 {offsets = [0, 0], sizes = [1, 128], strides = [1, 1]} : vector<2x128xf32> to vector<1x128xf32>
    %25 = vector.broadcast %24 : vector<1x128xf32> to vector<32x128xf32>
    %26 = arith.subf %2, %25 : vector<32x128xf32>
    %27 = vector.broadcast %23 : vector<1x128xf32> to vector<32x128xf32>
    %28 = arith.mulf %27, %26 : vector<32x128xf32>
    %29 = vector.extract_strided_slice %22 {offsets = [1, 0], sizes = [1, 128], strides = [1, 1]} : vector<2x128xf32> to vector<1x128xf32>
    %30 = vector.broadcast %29 : vector<1x128xf32> to vector<32x128xf32>
    %31 = arith.mulf %28, %30 : vector<32x128xf32>
    %c0_15 = arith.constant 0 : index
    %c0_16 = arith.constant 0 : index
    %32 = vector.load %arg5[%c0_15, %c0_16] : memref<1x128xf32, #tpu.memory_space<vmem>>, vector<1x128xf32>
    %33 = vector.broadcast %32 : vector<1x128xf32> to vector<32x128xf32>
    %34 = arith.addf %31, %33 : vector<32x128xf32>
    %c0_17 = arith.constant 0 : index
    %c0_18 = arith.constant 0 : index
    %35 = vector.load %arg2[%c0_17, %c0_18] : memref<32x128xf32, #tpu.memory_space<vmem>>, vector<32x128xf32>
    %36 = arith.addf %34, %35 : vector<32x128xf32>
    %c0_19 = arith.constant 0 : index
    %c0_20 = arith.constant 0 : index
    %37 = vector.load %arg11[%c0_19, %c0_20] : memref<2x32xf32, #tpu.memory_space<vmem>>, vector<2x32xf32>
    %cst_21 = arith.constant dense<0.000000e+00> : vector<2x128xf32>
    %38 = tpu.matmul %37, %36, %cst_21 {dimension_numbers = #tpu.dot_dimension_numbers<[1], [0], [0], [1], [0, 0, 1, 1], [], []>} : vector<2x32xf32>, vector<32x128xf32>, vector<2x128xf32> -> vector<2x128xf32>
    %c0_22 = arith.constant 0 : index
    %c0_23 = arith.constant 0 : index
    %39 = vector.load %arg12[%c0_22, %c0_23] : memref<128x32xf32, #tpu.memory_space<vmem>>, vector<128x32xf32>
    %cst_24 = arith.constant dense<0.000000e+00> : vector<2x32xf32>
    %40 = tpu.matmul %38, %39, %cst_24 {dimension_numbers = #tpu.dot_dimension_numbers<[1], [0], [0], [1], [0, 0, 1, 1], [], []>} : vector<2x128xf32>, vector<128x32xf32>, vector<2x32xf32> -> vector<2x32xf32>
    %cst_25 = arith.constant dense<0.000000e+00> : vector<32xf32>
    %41 = vector.multi_reduction <add>, %40, %cst_25 [0] : vector<2x32xf32> to vector<32xf32>
    %42 = vector.shape_cast %41 : vector<32xf32> to vector<1x32xf32>
    %cst_26 = arith.constant 2.000000e+00 : f32
    %43 = vector.broadcast %cst_26 : f32 to vector<1x32xf32>
    %44 = arith.divf %42, %43 : vector<1x32xf32>
    %45 = arith.mulf %40, %40 : vector<2x32xf32>
    %cst_27 = arith.constant dense<0.000000e+00> : vector<32xf32>
    %46 = vector.multi_reduction <add>, %45, %cst_27 [0] : vector<2x32xf32> to vector<32xf32>
    %47 = vector.shape_cast %46 : vector<32xf32> to vector<1x32xf32>
    %cst_28 = arith.constant 2.000000e+00 : f32
    %48 = vector.broadcast %cst_28 : f32 to vector<1x32xf32>
    %49 = arith.divf %47, %48 : vector<1x32xf32>
    %50 = arith.mulf %44, %44 : vector<1x32xf32>
    %51 = arith.subf %49, %50 : vector<1x32xf32>
    %cst_29 = arith.constant 0.000000e+00 : f32
    %52 = vector.broadcast %cst_29 : f32 to vector<1x32xf32>
    %53 = arith.maximumf %51, %52 : vector<1x32xf32>
    %c0_30 = arith.constant 0 : index
    %c0_31 = arith.constant 0 : index
    %54 = vector.load %arg13[%c0_30, %c0_31] : memref<1x32xf32, #tpu.memory_space<vmem>>, vector<1x32xf32>
    %55 = vector.broadcast %44 : vector<1x32xf32> to vector<2x32xf32>
    %56 = arith.subf %40, %55 : vector<2x32xf32>
    %57 = vector.broadcast %54 : vector<1x32xf32> to vector<2x32xf32>
    %58 = arith.mulf %57, %56 : vector<2x32xf32>
    %cst_32 = arith.constant 9.99999974E-6 : f32
    %59 = vector.broadcast %cst_32 : f32 to vector<1x32xf32>
    %60 = arith.addf %53, %59 : vector<1x32xf32>
    %61 = math.rsqrt %60 : vector<1x32xf32>
    %62 = vector.broadcast %61 : vector<1x32xf32> to vector<2x32xf32>
    %63 = arith.mulf %58, %62 : vector<2x32xf32>
    %c0_33 = arith.constant 0 : index
    %c0_34 = arith.constant 0 : index
    %64 = vector.load %arg14[%c0_33, %c0_34] : memref<1x32xf32, #tpu.memory_space<vmem>>, vector<1x32xf32>
    %65 = vector.broadcast %64 : vector<1x32xf32> to vector<2x32xf32>
    %66 = arith.addf %63, %65 : vector<2x32xf32>
    %cst_35 = arith.constant 0.000000e+00 : f32
    %67 = vector.broadcast %cst_35 : f32 to vector<2x32xf32>
    %68 = arith.maximumf %66, %67 : vector<2x32xf32>
    %c0_36 = arith.constant 0 : index
    %c0_37 = arith.constant 0 : index
    %69 = vector.load %arg15[%c0_36, %c0_37] : memref<32x8xf32, #tpu.memory_space<vmem>>, vector<32x8xf32>
    %cst_38 = arith.constant dense<0.000000e+00> : vector<2x8xf32>
    %70 = tpu.matmul %68, %69, %cst_38 {dimension_numbers = #tpu.dot_dimension_numbers<[1], [0], [0], [1], [0, 0, 1, 1], [], []>} : vector<2x32xf32>, vector<32x8xf32>, vector<2x8xf32> -> vector<2x8xf32>
    %c0_39 = arith.constant 0 : index
    %c0_40 = arith.constant 0 : index
    %71 = vector.load %arg16[%c0_39, %c0_40] : memref<1x8xf32, #tpu.memory_space<vmem>>, vector<1x8xf32>
    %72 = vector.broadcast %71 : vector<1x8xf32> to vector<2x8xf32>
    %73 = arith.addf %70, %72 : vector<2x8xf32>
    %cst_41 = arith.constant 0.000000e+00 : f32
    %74 = vector.broadcast %cst_41 : f32 to vector<2x8xf32>
    %75 = arith.subf %74, %73 : vector<2x8xf32>
    %76 = math.exp %75 : vector<2x8xf32>
    %cst_42 = arith.constant 1.000000e+00 : f32
    %77 = vector.broadcast %cst_42 : f32 to vector<2x8xf32>
    %78 = arith.addf %77, %76 : vector<2x8xf32>
    %cst_43 = arith.constant 1.000000e+00 : f32
    %79 = vector.broadcast %cst_43 : f32 to vector<2x8xf32>
    %80 = arith.divf %79, %78 : vector<2x8xf32>
    %c0_44 = arith.constant 0 : index
    %c0_45 = arith.constant 0 : index
    %81 = vector.load %arg6[%c0_44, %c0_45] : memref<8x128xf32, #tpu.memory_space<vmem>>, vector<8x128xf32>
    %cst_46 = arith.constant dense<0.000000e+00> : vector<2x128xf32>
    %82 = tpu.matmul %80, %81, %cst_46 {dimension_numbers = #tpu.dot_dimension_numbers<[1], [0], [0], [1], [0, 0, 1, 1], [], []>} : vector<2x8xf32>, vector<8x128xf32>, vector<2x128xf32> -> vector<2x128xf32>
    %c0_47 = arith.constant 0 : index
    %c0_48 = arith.constant 0 : index
    %83 = vector.load %arg10[%c0_47, %c0_48] : memref<32x2xf32, #tpu.memory_space<vmem>>, vector<32x2xf32>
    %cst_49 = arith.constant dense<0.000000e+00> : vector<32x128xf32>
    %84 = tpu.matmul %83, %82, %cst_49 {dimension_numbers = #tpu.dot_dimension_numbers<[1], [0], [0], [1], [0, 0, 1, 1], [], []>} : vector<32x2xf32>, vector<2x128xf32>, vector<32x128xf32> -> vector<32x128xf32>
    %85 = arith.subf %34, %35 : vector<32x128xf32>
    %86 = arith.mulf %84, %85 : vector<32x128xf32>
    %87 = arith.addf %35, %86 : vector<32x128xf32>
    %c0_50 = arith.constant 0 : index
    %c0_51 = arith.constant 0 : index
    %88 = vector.load %arg23[%c0_50, %c0_51] : memref<32x128xf32, #tpu.memory_space<vmem>>, vector<32x128xf32>
    tpu.vector_store %arg23[%c0_50, %c0_51], %87 {strides = array<i32>} : memref<32x128xf32, #tpu.memory_space<vmem>>, vector<32x128xf32>,
    %89 = arith.truncf %87 : vector<32x128xf32> to vector<32x128xbf16>
    %c0_52 = arith.constant 0 : index
    %c0_53 = arith.constant 0 : index
    %c0_54 = arith.constant 0 : index
    %90 = vector.load %arg17[%c0_52, %c0_53, %c0_54] : memref<3x128x128xbf16, #tpu.memory_space<vmem>>, vector<1x128x128xbf16>
    %91 = vector.shape_cast %90 : vector<1x128x128xbf16> to vector<128x128xbf16>
    %cst_55 = arith.constant dense<0.000000e+00> : vector<32x128xf32>
    %92 = tpu.matmul %89, %91, %cst_55 {dimension_numbers = #tpu.dot_dimension_numbers<[1], [0], [0], [1], [0, 0, 1, 1], [], []>} : vector<32x128xbf16>, vector<128x128xbf16>, vector<32x128xf32> -> vector<32x128xf32>
    %c1 = arith.constant 1 : index
    %c0_56 = arith.constant 0 : index
    %c0_57 = arith.constant 0 : index
    %93 = vector.load %arg17[%c1, %c0_56, %c0_57] : memref<3x128x128xbf16, #tpu.memory_space<vmem>>, vector<1x128x128xbf16>
    %94 = vector.shape_cast %93 : vector<1x128x128xbf16> to vector<128x128xbf16>
    %cst_58 = arith.constant dense<0.000000e+00> : vector<32x128xf32>
    %95 = tpu.matmul %89, %94, %cst_58 {dimension_numbers = #tpu.dot_dimension_numbers<[1], [0], [0], [1], [0, 0, 1, 1], [], []>} : vector<32x128xbf16>, vector<128x128xbf16>, vector<32x128xf32> -> vector<32x128xf32>
    %c2 = arith.constant 2 : index
    %c0_59 = arith.constant 0 : index
    %c0_60 = arith.constant 0 : index
    %96 = vector.load %arg17[%c2, %c0_59, %c0_60] : memref<3x128x128xbf16, #tpu.memory_space<vmem>>, vector<1x128x128xbf16>
    %97 = vector.shape_cast %96 : vector<1x128x128xbf16> to vector<128x128xbf16>
    %cst_61 = arith.constant dense<0.000000e+00> : vector<32x128xf32>
    %98 = tpu.matmul %89, %97, %cst_61 {dimension_numbers = #tpu.dot_dimension_numbers<[1], [0], [0], [1], [0, 0, 1, 1], [], []>} : vector<32x128xbf16>, vector<128x128xbf16>, vector<32x128xf32> -> vector<32x128xf32>
    %cst_62 = arith.constant 0.000000e+00 : f32
    %99 = vector.broadcast %cst_62 : f32 to vector<1x128xf32>
    %100 = vector.extract_strided_slice %92 {offsets = [0, 0], sizes = [31, 128], strides = [1, 1]} : vector<32x128xf32> to vector<31x128xf32>
    %101 = tpu.concatenate %99, %100 in 0 : vector<1x128xf32>, vector<31x128xf32> -> vector<32x128xf32>
    %102 = vector.extract_strided_slice %98 {offsets = [1, 0], sizes = [31, 128], strides = [1, 1]} : vector<32x128xf32> to vector<31x128xf32>
    %103 = tpu.concatenate %102, %99 in 0 : vector<31x128xf32>, vector<1x128xf32> -> vector<32x128xf32>
    %c0_63 = arith.constant 0 : index
    %c0_64 = arith.constant 0 : index
    %104 = vector.load %arg20[%c0_63, %c0_64] : memref<32x1xf32, #tpu.memory_space<vmem>>, vector<32x1xf32>
    %105 = vector.broadcast %104 : vector<32x1xf32> to vector<32x128xf32>
    %106 = arith.mulf %101, %105 : vector<32x128xf32>
    %107 = arith.addf %95, %106 : vector<32x128xf32>
    %c0_65 = arith.constant 0 : index
    %c0_66 = arith.constant 0 : index
    %108 = vector.load %arg21[%c0_65, %c0_66] : memref<32x1xf32, #tpu.memory_space<vmem>>, vector<32x1xf32>
    %109 = vector.broadcast %108 : vector<32x1xf32> to vector<32x128xf32>
    %110 = arith.mulf %103, %109 : vector<32x128xf32>
    %111 = arith.addf %107, %110 : vector<32x128xf32>
    %cst_67 = arith.constant dense<0.000000e+00> : vector<128xf32>
    %112 = vector.multi_reduction <add>, %111, %cst_67 [0] : vector<32x128xf32> to vector<128xf32>
    %113 = vector.shape_cast %112 : vector<128xf32> to vector<1x128xf32>
    %114 = arith.mulf %111, %111 : vector<32x128xf32>
    %cst_68 = arith.constant dense<0.000000e+00> : vector<128xf32>
    %115 = vector.multi_reduction <add>, %114, %cst_68 [0] : vector<32x128xf32> to vector<128xf32>
    %116 = vector.shape_cast %115 : vector<128xf32> to vector<1x128xf32>
    %117 = tpu.concatenate %113, %116 in 0 : vector<1x128xf32>, vector<1x128xf32> -> vector<2x128xf32>
    %c0_69 = arith.constant 0 : index
    %c0_70 = arith.constant 0 : index
    %118 = vector.load %arg9[%c0_69, %c0_70] : memref<128x8xf32, #tpu.memory_space<vmem>>, vector<128x8xf32>
    %cst_71 = arith.constant dense<0.000000e+00> : vector<2x8xf32>
    %119 = tpu.matmul %117, %118, %cst_71 {dimension_numbers = #tpu.dot_dimension_numbers<[1], [0], [0], [1], [0, 0, 1, 1], [], []>} : vector<2x128xf32>, vector<128x8xf32>, vector<2x8xf32> -> vector<2x8xf32>
    %120 = vector.extract_strided_slice %119 {offsets = [0, 0], sizes = [1, 8], strides = [1, 1]} : vector<2x8xf32> to vector<1x8xf32>
    %121 = vector.extract_strided_slice %119 {offsets = [1, 0], sizes = [1, 8], strides = [1, 1]} : vector<2x8xf32> to vector<1x8xf32>
    %122 = arith.mulf %120, %120 : vector<1x8xf32>
    %123 = arith.subf %121, %122 : vector<1x8xf32>
    %cst_72 = arith.constant 0.000000e+00 : f32
    %124 = vector.broadcast %cst_72 : f32 to vector<1x8xf32>
    %125 = arith.maximumf %123, %124 : vector<1x8xf32>
    %cst_73 = arith.constant 9.99999974E-6 : f32
    %126 = vector.broadcast %cst_73 : f32 to vector<1x8xf32>
    %127 = arith.addf %125, %126 : vector<1x8xf32>
    %128 = math.rsqrt %127 : vector<1x8xf32>
    %129 = tpu.concatenate %120, %128 in 0 : vector<1x8xf32>, vector<1x8xf32> -> vector<2x8xf32>
    %c0_74 = arith.constant 0 : index
    %c0_75 = arith.constant 0 : index
    %130 = vector.load %arg8[%c0_74, %c0_75] : memref<8x128xf32, #tpu.memory_space<vmem>>, vector<8x128xf32>
    %cst_76 = arith.constant dense<0.000000e+00> : vector<2x128xf32>
    %131 = tpu.matmul %129, %130, %cst_76 {dimension_numbers = #tpu.dot_dimension_numbers<[1], [0], [0], [1], [0, 0, 1, 1], [], []>} : vector<2x8xf32>, vector<8x128xf32>, vector<2x128xf32> -> vector<2x128xf32>
    %c0_77 = arith.constant 0 : index
    %c0_78 = arith.constant 0 : index
    %132 = vector.load %arg18[%c0_77, %c0_78] : memref<1x128xf32, #tpu.memory_space<vmem>>, vector<1x128xf32>
    %133 = vector.extract_strided_slice %131 {offsets = [0, 0], sizes = [1, 128], strides = [1, 1]} : vector<2x128xf32> to vector<1x128xf32>
    %134 = vector.broadcast %133 : vector<1x128xf32> to vector<32x128xf32>
    %135 = arith.subf %111, %134 : vector<32x128xf32>
    %136 = vector.broadcast %132 : vector<1x128xf32> to vector<32x128xf32>
    %137 = arith.mulf %136, %135 : vector<32x128xf32>
    %138 = vector.extract_strided_slice %131 {offsets = [1, 0], sizes = [1, 128], strides = [1, 1]} : vector<2x128xf32> to vector<1x128xf32>
    %139 = vector.broadcast %138 : vector<1x128xf32> to vector<32x128xf32>
    %140 = arith.mulf %137, %139 : vector<32x128xf32>
    %c0_79 = arith.constant 0 : index
    %c0_80 = arith.constant 0 : index
    %141 = vector.load %arg19[%c0_79, %c0_80] : memref<1x128xf32, #tpu.memory_space<vmem>>, vector<1x128xf32>
    %142 = vector.broadcast %141 : vector<1x128xf32> to vector<32x128xf32>
    %143 = arith.addf %140, %142 : vector<32x128xf32>
    %c0_81 = arith.constant 0 : index
    %c0_82 = arith.constant 0 : index
    %144 = vector.load %arg22[%c0_81, %c0_82] : memref<32x128xf32, #tpu.memory_space<vmem>>, vector<32x128xf32>
    tpu.vector_store %arg22[%c0_81, %c0_82], %143 {strides = array<i32>} : memref<32x128xf32, #tpu.memory_space<vmem>>, vector<32x128xf32>,
    return
  }
  func.func @transform_0(%arg0: i32) -> (i32, i32) {
    %c0_i32 = arith.constant 0 : i32
    %c0_i32_0 = arith.constant 0 : i32
    %c0_i32_1 = arith.constant 0 : i32
    return %c0_i32, %c0_i32_0 : i32, i32
  }
  func.func @transform_1(%arg0: i32) -> (i32, i32) {
    %c0_i32 = arith.constant 0 : i32
    %c0_i32_0 = arith.constant 0 : i32
    %c0_i32_1 = arith.constant 0 : i32
    return %c0_i32, %c0_i32_0 : i32, i32
  }
  func.func @transform_2(%arg0: i32) -> (i32, i32) {
    %c0_i32 = arith.constant 0 : i32
    %c0_i32_0 = arith.constant 0 : i32
    %c0_i32_1 = arith.constant 0 : i32
    return %c0_i32, %c0_i32_0 : i32, i32
  }
  func.func @transform_3(%arg0: i32) -> (i32, i32) {
    %c0_i32 = arith.constant 0 : i32
    %c0_i32_0 = arith.constant 0 : i32
    %c0_i32_1 = arith.constant 0 : i32
    return %c0_i32, %c0_i32_0 : i32, i32
  }
  func.func @transform_4(%arg0: i32) -> (i32, i32) {
    %c0_i32 = arith.constant 0 : i32
    %c0_i32_0 = arith.constant 0 : i32
    %c0_i32_1 = arith.constant 0 : i32
    return %c0_i32, %c0_i32_0 : i32, i32
  }
  func.func @transform_5(%arg0: i32) -> (i32, i32) {
    %c0_i32 = arith.constant 0 : i32
    %c0_i32_0 = arith.constant 0 : i32
    %c0_i32_1 = arith.constant 0 : i32
    return %c0_i32, %c0_i32_0 : i32, i32
  }
  func.func @transform_6(%arg0: i32) -> (i32, i32) {
    %c0_i32 = arith.constant 0 : i32
    %c0_i32_0 = arith.constant 0 : i32
    %c0_i32_1 = arith.constant 0 : i32
    return %c0_i32, %c0_i32_0 : i32, i32
  }
  func.func @transform_7(%arg0: i32) -> (i32, i32) {
    %c0_i32 = arith.constant 0 : i32
    %c0_i32_0 = arith.constant 0 : i32
    %c0_i32_1 = arith.constant 0 : i32
    return %c0_i32, %c0_i32_0 : i32, i32
  }
  func.func @transform_8(%arg0: i32) -> (i32, i32) {
    %c0_i32 = arith.constant 0 : i32
    %c0_i32_0 = arith.constant 0 : i32
    %c0_i32_1 = arith.constant 0 : i32
    return %c0_i32, %c0_i32_0 : i32, i32
  }
  func.func @transform_9(%arg0: i32) -> (i32, i32) {
    %c0_i32 = arith.constant 0 : i32
    %c0_i32_0 = arith.constant 0 : i32
    %c0_i32_1 = arith.constant 0 : i32
    return %c0_i32, %c0_i32_0 : i32, i32
  }
  func.func @transform_10(%arg0: i32) -> (i32, i32) {
    %c0_i32 = arith.constant 0 : i32
    %c0_i32_0 = arith.constant 0 : i32
    %c0_i32_1 = arith.constant 0 : i32
    return %c0_i32, %c0_i32_0 : i32, i32
  }
  func.func @transform_11(%arg0: i32) -> (i32, i32) {
    %c0_i32 = arith.constant 0 : i32
    %c0_i32_0 = arith.constant 0 : i32
    %c0_i32_1 = arith.constant 0 : i32
    return %c0_i32, %c0_i32_0 : i32, i32
  }
  func.func @transform_12(%arg0: i32) -> (i32, i32) {
    %c0_i32 = arith.constant 0 : i32
    %c0_i32_0 = arith.constant 0 : i32
    %c0_i32_1 = arith.constant 0 : i32
    return %c0_i32, %c0_i32_0 : i32, i32
  }
  func.func @transform_13(%arg0: i32) -> (i32, i32) {
    %c0_i32 = arith.constant 0 : i32
    %c0_i32_0 = arith.constant 0 : i32
    %c0_i32_1 = arith.constant 0 : i32
    return %c0_i32, %c0_i32_0 : i32, i32
  }
  func.func @transform_14(%arg0: i32) -> (i32, i32) {
    %c0_i32 = arith.constant 0 : i32
    %c0_i32_0 = arith.constant 0 : i32
    %c0_i32_1 = arith.constant 0 : i32
    return %c0_i32, %c0_i32_0 : i32, i32
  }
  func.func @transform_15(%arg0: i32) -> (i32, i32) {
    %c0_i32 = arith.constant 0 : i32
    %c0_i32_0 = arith.constant 0 : i32
    %c0_i32_1 = arith.constant 0 : i32
    return %c0_i32, %c0_i32_0 : i32, i32
  }
  func.func @transform_16(%arg0: i32) -> (i32, i32, i32) {
    %c0_i32 = arith.constant 0 : i32
    %c0_i32_0 = arith.constant 0 : i32
    %c0_i32_1 = arith.constant 0 : i32
    %c0_i32_2 = arith.constant 0 : i32
    return %c0_i32, %c0_i32_0, %c0_i32_1 : i32, i32, i32
  }
  func.func @transform_17(%arg0: i32) -> (i32, i32) {
    %c0_i32 = arith.constant 0 : i32
    %c0_i32_0 = arith.constant 0 : i32
    %c0_i32_1 = arith.constant 0 : i32
    return %c0_i32, %c0_i32_0 : i32, i32
  }
  func.func @transform_18(%arg0: i32) -> (i32, i32) {
    %c0_i32 = arith.constant 0 : i32
    %c0_i32_0 = arith.constant 0 : i32
    %c0_i32_1 = arith.constant 0 : i32
    return %c0_i32, %c0_i32_0 : i32, i32
  }
  func.func @transform_19(%arg0: i32) -> (i32, i32) {
    %c0_i32 = arith.constant 0 : i32
    %c0_i32_0 = arith.constant 0 : i32
    %c0_i32_1 = arith.constant 0 : i32
    return %c0_i32, %c0_i32_0 : i32, i32
  }
  func.func @transform_20(%arg0: i32) -> (i32, i32) {
    %c0_i32 = arith.constant 0 : i32
    %c0_i32_0 = arith.constant 0 : i32
    %c0_i32_1 = arith.constant 0 : i32
    return %c0_i32, %c0_i32_0 : i32, i32
  }
  func.func @transform_21(%arg0: i32) -> (i32, i32) {
    %c0_i32 = arith.constant 0 : i32
    %c0_i32_0 = arith.constant 0 : i32
    %c0_i32_1 = arith.constant 0 : i32
    return %c0_i32, %c0_i32_0 : i32, i32
  }
  func.func @transform_22(%arg0: i32) -> (i32, i32) {
    %c0_i32 = arith.constant 0 : i32
    %c0_i32_0 = arith.constant 0 : i32
    %c0_i32_1 = arith.constant 0 : i32
    return %c0_i32, %c0_i32_0 : i32, i32
  }
}

</mosaic_0001>

<bundles_post_ra>
// kernel: sk_forward.1
= control target key start
LH: loop header
LB: loop body
LE: loop exit
PB: predicated region body
PF: predicated region fallthrough
CT: control target
= control target key end

     0   :  { %v2121_v1 = vmov 0.0|0.0   ;;  %vm117_vm0 = vcmask 523264   ;;  %vm2122_vm1 = vmmov 0   ;;  %v2123_v27 = vmov 0.0   ;;  %s2728_s2 = inlined_call_operand.vmem [shape: bf16[64,128], index: 2, kind: input, shape index: {}]   ;;  %s2729_s0 = inlined_call_operand.vmem [shape: bf16[32,64], index: 0, kind: input, shape index: {}]   ;;  %s2730_s6 = inlined_call_operand.vmem [shape: f32[128,8], index: 6, kind: input, shape index: {}]   ;;  %s2731_s5 = inlined_call_operand.vmem [shape: f32[8,128], index: 5, kind: input, shape index: {}]   ;;  %s2732_s3 = inlined_call_operand.vmem [shape: f32[1,128], index: 3, kind: input, shape index: {}]   ;;  %s2733_s4 = inlined_call_operand.vmem [shape: f32[1,128], index: 4, kind: input, shape index: {}]   ;;  %s2734_s1 = inlined_call_operand.vmem [shape: f32[32,128], index: 1, kind: input, shape index: {}]   ;;  %s2735_s11 = inlined_call_operand.vmem [shape: f32[128,32], index: 11, kind: input, shape index: {}]   ;;  %s2736_s10 = inlined_call_operand.vmem [shape: f32[2,32], index: 10, kind: input, shape index: {}]   ;;  %s2737_s14 = inlined_call_operand.vmem [shape: f32[32,8], index: 14, kind: input, shape index: {}]   ;;  %s2738_s12 = inlined_call_operand.vmem [shape: f32[1,32], index: 12, kind: input, shape index: {}]   ;;  %s2739_s13 = inlined_call_operand.vmem [shape: f32[1,32], index: 13, kind: input, shape index: {}]   ;;  %s2740_s15 = inlined_call_operand.vmem [shape: f32[1,8], index: 15, kind: input, shape index: {}]   ;;  %s2741_s9 = inlined_call_operand.vmem [shape: f32[32,2], index: 9, kind: input, shape index: {}]   ;;  %s2742_s16 = inlined_call_operand.vmem [shape: bf16[3,128,128], index: 16, kind: input, shape index: {}]   ;;  %s2743_s19 = inlined_call_operand.vmem [shape: f32[32,1], index: 19, kind: input, shape index: {}]   ;;  %s2744_s20 = inlined_call_operand.vmem [shape: f32[32,1], index: 20, kind: input, shape index: {}]   ;;  %s2745_s22 = inlined_call_operand.vmem [shape: f32[32,128], index: 22, kind: output, shape index: {1}]   ;;  %s2746_s8 = inlined_call_operand.vmem [shape: f32[128,8], index: 8, kind: input, shape index: {}]   ;;  %s2747_s7 = inlined_call_operand.vmem [shape: f32[8,128], index: 7, kind: input, shape index: {}]   ;;  %s2748_s17 = inlined_call_operand.vmem [shape: f32[1,128], index: 17, kind: input, shape index: {}]   ;;  %s2749_s18 = inlined_call_operand.vmem [shape: f32[1,128], index: 18, kind: input, shape index: {}]   ;;  %s2750_s21 = inlined_call_operand.vmem [shape: f32[32,128], index: 21, kind: output, shape index: {0}]  }
   0x1   :  { %2755 = sst [smem:[#allocation2_spill]] %s2728_s2  ;;  %1991 = vmatprep.subr.bf16.mxu1 %v2121_v1  ;;  %1813 = vmatprep.mubr.msk.f32.mxu1 %vm2122_vm1, %v2123_v27  ;;  %vm195_vm2 = vcmask 1040384   ;;  %vm293_vm3 = vcmask 64512   ;;  %vm414_vm4 = vcmask 261120   ;;  %vm574_vm5 = vcmask 254976  }
   0x2   :  { %2756 = sst [smem:[#allocation3_spill]] %s2729_s0  ;;  %s2762_s29 = sld [smem:[#allocation2_spill]]  ;;  %vm784_vm6 = vcmask 15360   ;;  %vm797_vm7 = vcmask 1041408   ;;  %vm1168_vm8 = vcmask 1046528  }
   0x3   :  { %2757 = sst [smem:[#allocation4_spill]] %s2730_s6  ;;  %s2763_s24 = sld [smem:[#allocation3_spill]] }
   0x4   :  { %2758 = sst [smem:[#allocation5_spill]] %s2731_s5  ;;  %s2764_s26 = sld [smem:[#allocation4_spill]] }
   0x5   :  { %2759 = sst [smem:[#allocation6_spill]] %s2732_s3  ;;  %s2765_s23 = sld [smem:[#allocation5_spill]] }
   0x6   :  { %2760 = sst [smem:[#allocation7_spill]] %s2733_s4 }
   0x7   :  { %2761 = sst [smem:[#allocation8_spill]] %s2734_s1  ;;  %s2766_s1 = sld [smem:[#allocation6_spill]] }
   0x8   :  { %v2081_v0 = vld [vmem:[%s2762_s29] sm:$0xff]   ;;  %v2082_v2 = vld [vmem:[%s2762_s29 + $0x8] sm:$0xff]   ;;  %v2083_v3 = vld [vmem:[%s2762_s29 + $0x10] sm:$0xff]   ;;  %s2767_s6 = sld [smem:[#allocation7_spill]]  ;;  %s2768_s5 = sld [smem:[#allocation8_spill]] }
   0x9   :  { %1769 = vmatprep.subr.bf16.mxu0 %v2081_v0  ;;  %v2085_v4 = vld [vmem:[%s2763_s24] sm:$0xff]   ;;  %v2084_v10 = vld [vmem:[%s2762_s29 + $0x18] sm:$0xff]   ;;  %v2086_v12 = vld [vmem:[%s2763_s24 + $0x8] sm:$0xff]  }
   0xa   :  { %1770 = vmatpush3.bf16.msra.mxu0 %v2081_v0  ;;  %1777 = vmatprep.mubr.msk.bf16.mxu0 %vm117_vm0, %v2085_v4  ;;  %v197_v5 = vld [vmem:[%s2764_s26] sm:$0xff]  ;;  %v198_v6 = vld [vmem:[%s2764_s26 + $0x8] sm:$0xff]  ;;  %v199_v7 = vld [vmem:[%s2764_s26 + $0x10] sm:$0xff] }
   0xb   :  { %1771 = vmatprep.subr.bf16.mxu0 %v2082_v2  ;;  %v1992_v8 = vpack.c.bf16 %v198_v6, %v197_v5  ;;  %v200_v9 = vld [vmem:[%s2764_s26 + $0x18] sm:$0xff]  ;;  %v201_v13 = vld [vmem:[%s2764_s26 + $0x20] sm:$0xff]  ;;  %v202_v14 = vld [vmem:[%s2764_s26 + $0x28] sm:$0xff]  ;;  %v368_v6 = vlaneseq }
   0xc   :  { %v1995_v11 = vpack.c.bf16 %v200_v9, %v199_v7  ;;  %v1998_v15 = vpack.c.bf16 %v202_v14, %v201_v13  ;;  %v203_v16 = vld [vmem:[%s2764_s26 + $0x30] sm:$0xff]  ;;  %v204_v17 = vld [vmem:[%s2764_s26 + $0x38] sm:$0xff]  ;;  %v205_v19 = vld [vmem:[%s2764_s26 + $0x40] sm:$0xff] }
   0xd   :  { %1993 = vmatpush3.bf16.msra.mxu1 %v1992_v8  ;;  %v2001_v18 = vpack.c.bf16 %v204_v17, %v203_v16  ;;  %v206_v20 = vld [vmem:[%s2764_s26 + $0x48] sm:$0xff]  ;;  %v207_v22 = vld [vmem:[%s2764_s26 + $0x50] sm:$0xff]  ;;  %v208_v23 = vld [vmem:[%s2764_s26 + $0x58] sm:$0xff]  ;;  %v2351_v7 = vshrl.u32 %v368_v6, 7 }
   0xe   :  { %1772 = vmatpush3.bf16.msra.mxu0 %v2082_v2  ;;  %1994 = vmatprep.subr.bf16.mxu1 %v2121_v1  ;;  %v2004_v21 = vpack.c.bf16 %v206_v20, %v205_v19  ;;  %v2007_v24 = vpack.c.bf16 %v208_v23, %v207_v22  ;;  %v209_v25 = vld [vmem:[%s2764_s26 + $0x60] sm:$0xff]  ;;  %v210_v26 = vld [vmem:[%s2764_s26 + $0x68] sm:$0xff]  ;;  %v211_v29 = vld [vmem:[%s2764_s26 + $0x70] sm:$0xff] }
   0xf   :  { %1773 = vmatprep.subr.bf16.mxu0 %v2083_v3  ;;  %v2010_v28 = vpack.c.bf16 %v210_v26, %v209_v25  ;;  %v212_v30 = vld [vmem:[%s2764_s26 + $0x78] sm:$0xff]  ;;  %v2343_v59 = vld [vmem:[%s2765_s23] sm:$0xff]  ;;  %v370_v8 = vsub.s32 0, %v2351_v7 }
  0x10   :  { %v2013_v31 = vpack.c.bf16 %v212_v30, %v211_v29  ;;  %v1589_v13 = vld [vmem:[%s2766_s1] ss:$0 sm:$0xff]  ;;  %v2376_v30 = vld [vmem:[%s2768_s5 + $0x8] sm:$0xff] }
  0x11   :  { %1996 = vmatpush3.bf16.msra.mxu1 %v1995_v11  ;;  %v1590_v23 = vld [vmem:[%s2767_s6] ss:$0 sm:$0xff] }
  0x12   :  { %1774 = vmatpush3.bf16.msra.mxu0 %v2083_v3  ;;  %1997 = vmatprep.subr.bf16.mxu1 %v2121_v1  ;;  %v2371_v29 = vld [vmem:[%s2768_s5] sm:$0xff] }
  0x13   :  { %1775 = vmatprep.subr.bf16.mxu0 %v2084_v10 }
  0x15   :  { %1999 = vmatpush3.bf16.msra.mxu1 %v1998_v15 }
  0x16   :  { %1776 = vmatpush3.bf16.msra.mxu0 %v2084_v10  ;;  %2000 = vmatprep.subr.bf16.mxu1 %v2121_v1  ;;  %v388_v10 = vsub.s32 1, %v2351_v7 }
  0x17   :  { %2015 = vmatprep.subr.bf16.mxu0 %v2121_v1 }
  0x19   :  { %1778 = vmatmul.mubr.msk.bf16.vlgmr.msra.gmra.mrb[0].mxu0 %vm117_vm0, %v2086_v12  ;;  %2002 = vmatpush3.bf16.msra.mxu1 %v2001_v18 }
  0x1a   :  { %2003 = vmatprep.subr.bf16.mxu1 %v2121_v1  ;;  %1829 = vmatprep.mubr.msk.f32.mxu0 %vm2122_vm1, %v2123_v27 }
  0x1d   :  { %2005 = vmatpush3.bf16.msra.mxu1 %v2004_v21 }
  0x1e   :  { %2006 = vmatprep.subr.bf16.mxu1 %v2121_v1 }
  0x21   :  { %2008 = vmatpush3.bf16.msra.mxu1 %v2007_v24 }
  0x22   :  { %2009 = vmatprep.subr.bf16.mxu1 %v2121_v1 }
  0x25   :  { %2011 = vmatpush3.bf16.msra.mxu1 %v2010_v28 }
  0x26   :  { %2012 = vmatprep.subr.bf16.mxu1 %v2121_v1 }
  0x29   :  { %2014 = vmatpush3.bf16.msra.mxu1 %v2013_v31  ;;  %v2381_v31 = vld [vmem:[%s2768_s5 + $0x10] sm:$0xff] }
  0x2a   :  { %1816 = vmatprep.subr.mxu1 %v2123_v27 }
  0xec   :  { %v2322_v32 = vpop.f32.mrb[0].mxu0 }
  0xed   :  { %v2324_v33 = vpop.f32.mrb[1].mxu0  ;;  %v184_v39 = vmul.f32 %v2322_v32, %v2322_v32 }
  0xee   :  { %v2326_v34 = vpop.f32.mrb[2].mxu0  ;;  %v182_v36 = vmul.f32 %v2324_v33, %v2324_v33 }
  0xef   :  { %v161_v35 = vpop.f32.mrb[3].mxu0  ;;  %v185_v42 = vmul.f32 %v2326_v34, %v2326_v34 }
  0xf0   :  { %v173_v37 = vadd.f32 %v161_v35, %v2324_v33  ;;  %v183_v38 = vmul.f32 %v161_v35, %v161_v35 }
  0xf2   :  { %v174_v40 = vadd.f32 %v2322_v32, %v173_v37  ;;  %v186_v41 = vadd.f32 %v183_v38, %v182_v36 }
  0xf4   :  { %v175_v43 = vadd.f32 %v2326_v34, %v174_v40  ;;  %v187_v44 = vadd.f32 %v186_v41, %v184_v39 }
  0xf6   :  { %v176_v45 = vrot.slane %v175_v43, 4  ;;  %v188_v46 = vadd.f32 %v187_v44, %v185_v42  ;;  %v489_v44 = vld [vmem:[%s2735_s11 + $0x8] sm:$0xff] }
  0xf8   :  { %v177_v47 = vadd.f32 %v176_v45, %v175_v43  ;;  %v189_v48 = vrot.slane %v188_v46, 4  ;;  %v488_v43 = vld [vmem:[%s2735_s11] sm:$0xff] }
  0xf9   :  { %v413_v45 = vld [vmem:[%s2736_s10] sm:$0x3] }
  0xfa   :  { %v178_v49 = vrot.slane %v177_v47, 2  ;;  %v190_v50 = vadd.f32 %v189_v48, %v188_v46  ;;  %v2022_v46 = vpack.c.bf16 %v489_v44, %v488_v43  ;;  %v491_v48 = vld [vmem:[%s2735_s11 + $0x18] sm:$0xff] }
  0xfc   :  { %v179_v51 = vadd.f32 %v178_v49, %v177_v47  ;;  %v191_v52 = vrot.slane %v190_v50, 2  ;;  %v490_v47 = vld [vmem:[%s2735_s11 + $0x10] sm:$0xff] }
  0xfd   :  { %v2025_v49 = vpack.c.bf16 %v491_v48, %v490_v47 }
  0xfe   :  { %v180_v53 = vrot.slane %v179_v51, 1  ;;  %v192_v54 = vadd.f32 %v191_v52, %v190_v50  ;;  %v492_v50 = vld [vmem:[%s2735_s11 + $0x20] sm:$0xff] }
 0x100   :  { %v193_v55 = vrot.slane %v192_v54, 1  ;;  %v181_v56 = vadd.f32 %v180_v53, %v179_v51  ;;  %v493_v51 = vld [vmem:[%s2735_s11 + $0x28] sm:$0xff]  ;;  %v494_v53 = vld [vmem:[%s2735_s11 + $0x30] sm:$0xff] }
 0x101   :  { %v2028_v52 = vpack.c.bf16 %v493_v51, %v492_v50  ;;  %v1592_v50 = vld [vmem:[%s2738_s12] ss:$0 sm:$0xff] }
 0x102   :  { %v194_v57 = vadd.f32 %v193_v55, %v192_v54  ;;  %v495_v54 = vld [vmem:[%s2735_s11 + $0x38] sm:$0xff] }
 0x103   :  { %v2031_v55 = vpack.c.bf16 %v495_v54, %v494_v53  ;;  %v1593_v53 = vld [vmem:[%s2739_s13] ss:$0 sm:$0xff] }
 0x104   :  { %v196_v58 = vsel %vm195_vm2, %v181_v56, %v194_v57  ;;  %v496_v56 = vld [vmem:[%s2735_s11 + $0x40] sm:$0xff]  ;;  %v497_v57 = vld [vmem:[%s2735_s11 + $0x48] sm:$0xff] }
 0x105   :  { %1814 = vmatmul.mubr.f32.vlgmr.msra.gmra.mrb[0].mxu1 %v196_v58  ;;  %v2034_v58 = vpack.c.bf16 %v497_v57, %v496_v56  ;;  %v1594_v57 = vld [vmem:[%s2740_s15] ss:$0 sm:$0xff] }
 0x106   :  { %1818 = vmatprep.mubr.msk.f32.mxu1 %vm2122_vm1, %v2123_v27  ;;  %1817 = vmatpush3.msra.mxu1 %v2343_v59 }
 0x107   :  { %2045 = vmatprep.subr.bf16.mxu1 %v2121_v1 }
 0x1d8   :  { %v279_v60 = vpop.f32.mrb[0].mxu1 }
 0x1d9   :  { %v283_v61 = vmul.f32 %v279_v60, %v279_v60  ;;  %v1815_v62 = vpop.f32.mrb[1].mxu1 }
 0x1db   :  { %v285_v63 = vrot.slane %v283_v61, 7  ;;  %v499_v61 = vld [vmem:[%s2735_s11 + $0x58] sm:$0xff] }
 0x1dd   :  { %v287_v0 = vsub.f32 %v279_v60, %v285_v63  ;;  %v500_v63 = vld [vmem:[%s2735_s11 + $0x60] sm:$0xff] }
 0x1df   :  { %v288_v2 = vmax.f32 %v287_v0, 0.0  ;;  %v501_v0 = vld [vmem:[%s2735_s11 + $0x68] sm:$0xff] }
 0x1e1   :  { %v289_v3 = vadd.f32 1e-05, %v288_v2  ;;  %v2040_v2 = vpack.c.bf16 %v501_v0, %v500_v63 }
 0x1e3   :  { %2111 = vrsqrt.f32 %v289_v3  ;;  %v502_v3 = vld [vmem:[%s2735_s11 + $0x70] sm:$0xff] }
 0x1ed   :  { %v2112_v4 = vpop.eup %2111 }
 0x1ee   :  { %v291_v5 = vsel %vm195_vm2, %v279_v60, %v2112_v4  ;;  %v498_v60 = vld [vmem:[%s2735_s11 + $0x50] sm:$0xff]  ;;  %v503_v4 = vld [vmem:[%s2735_s11 + $0x78] sm:$0xff] }
 0x1ef   :  { %1819 = vmatmul.mubr.msk.f32.vlgmr.msra.gmra.mrb[2].mxu1 %vm293_vm3, %v291_v5  ;;  %v2037_v62 = vpack.c.bf16 %v499_v61, %v498_v60  ;;  %v2043_v5 = vpack.c.bf16 %v503_v4, %v502_v3  ;;  %v2088_v4 = vld [vmem:[%s2742_s16 + $0x80] sm:$0xff]  }
 0x1f0   :  { %1875 = vmatprep.mubr.msk.f32.mxu1 %vm2122_vm1, %v2123_v27 }
 0x2c2   :  { %v363_v9 = vpop.f32.mrb[2].mxu1 }
 0x2c3   :  { %v371_v11 = vrot.slane %v363_v9, %v370_v8  ;;  %v1820_v12 = vpop.f32.mrb[3].mxu1  ;;  %v389_v18 = vrot.slane %v363_v9, %v388_v10 }
 0x2c4   :  { %v618_v12 = vld [vmem:[%s2737_s14 + $0x8] sm:$0xff] }
 0x2c5   :  { %v372_v14 = vsub.f32 %v2324_v33, %v371_v11  ;;  %v373_v15 = vsub.f32 %v161_v35, %v371_v11  ;;  %v374_v16 = vsub.f32 %v2322_v32, %v371_v11  ;;  %v375_v17 = vsub.f32 %v2326_v34, %v371_v11  ;;  %v2386_v32 = vld [vmem:[%s2768_s5 + $0x18] sm:$0xff]  ;;  %v617_v11 = vld [vmem:[%s2737_s14] sm:$0xff] }
 0x2c7   :  { %v382_v19 = vmul.f32 %v1589_v13, %v372_v14  ;;  %v383_v20 = vmul.f32 %v1589_v13, %v373_v15  ;;  %v384_v21 = vmul.f32 %v1589_v13, %v374_v16  ;;  %v385_v22 = vmul.f32 %v1589_v13, %v375_v17  ;;  %v619_v14 = vld [vmem:[%s2737_s14 + $0x10] sm:$0xff]  ;;  %v620_v15 = vld [vmem:[%s2737_s14 + $0x18] sm:$0xff] }
 0x2c8   :  { %v2046_v13 = vpack.c.bf16 %v618_v12, %v617_v11  ;;  %v2049_v16 = vpack.c.bf16 %v620_v15, %v619_v14  ;;  %v2096_v11 = vld [vmem:[%s2742_s16 + $0xa0] sm:$0xff]   ;;  %v781_v14 = vld [vmem:[%s2741_s9 + $0x8] sm:$0xff] }
 0x2c9   :  { %v390_v24 = vmul.f32 %v389_v18, %v382_v19  ;;  %v391_v25 = vmul.f32 %v389_v18, %v383_v20  ;;  %v392_v26 = vmul.f32 %v389_v18, %v384_v21  ;;  %v393_v28 = vmul.f32 %v389_v18, %v385_v22  ;;  %v2087_v12 = vld [vmem:[%s2742_s16] sm:$0xff]  }
 0x2ca   :  { %2047 = vmatpush3.bf16.msra.mxu1 %v2046_v13 }
 0x2cb   :  { %v2388_v33 = vadd.f32 %v1590_v23, %v390_v24  ;;  %v2390_v34 = vadd.f32 %v1590_v23, %v391_v25  ;;  %v2392_v35 = vadd.f32 %v1590_v23, %v392_v26  ;;  %v2394_v36 = vadd.f32 %v1590_v23, %v393_v28  ;;  %2048 = vmatprep.subr.bf16.mxu1 %v2121_v1 }
 0x2cd   :  { %v409_v37 = vadd.f32 %v2371_v29, %v2388_v33  ;;  %v410_v38 = vadd.f32 %v2376_v30, %v2390_v34  ;;  %v411_v39 = vadd.f32 %v2381_v31, %v2392_v35  ;;  %v412_v40 = vadd.f32 %v2386_v32, %v2394_v36 }
 0x2ce   :  { %2050 = vmatpush3.bf16.msra.mxu1 %v2049_v16  ;;  %v782_v16 = vld [vmem:[%s2741_s9 + $0x10] sm:$0xff] }
 0x2cf   :  { %v2016_v41 = vpack.c.bf16 %v410_v38, %v409_v37  ;;  %v2019_v42 = vpack.c.bf16 %v412_v40, %v411_v39  ;;  %1878 = vmatprep.subr.mxu1 %v2123_v27 }
 0x2d1   :  { %2017 = vmatpush3.bf16.msra.mxu0 %v2016_v41 }
 0x2d2   :  { %2018 = vmatprep.subr.bf16.mxu0 %v2121_v1 }
 0x2d5   :  { %2020 = vmatpush3.bf16.msra.mxu0 %v2019_v42 }
 0x2d6   :  { %2021 = vmatprep.subr.bf16.mxu0 %v2121_v1 }
 0x2d8   :  { %1830 = vmatmul.mubr.msk.f32.vlgmr.msra.gmra.mrb[4].mxu0 %vm414_vm4, %v413_v45 }
 0x2d9   :  { %2023 = vmatpush3.bf16.msra.mxu0 %v2022_v46  ;;  %1864 = vmatprep.mubr.msk.f32.mxu0 %vm2122_vm1, %v2123_v27 }
 0x2da   :  { %2024 = vmatprep.subr.bf16.mxu0 %v2121_v1 }
 0x2dd   :  { %2026 = vmatpush3.bf16.msra.mxu0 %v2025_v49 }
 0x2de   :  { %2027 = vmatprep.subr.bf16.mxu0 %v2121_v1 }
 0x2e1   :  { %2029 = vmatpush3.bf16.msra.mxu0 %v2028_v52 }
 0x2e2   :  { %2030 = vmatprep.subr.bf16.mxu0 %v2121_v1 }
 0x2e5   :  { %2032 = vmatpush3.bf16.msra.mxu0 %v2031_v55 }
 0x2e6   :  { %2033 = vmatprep.subr.bf16.mxu0 %v2121_v1 }
 0x2e9   :  { %2035 = vmatpush3.bf16.msra.mxu0 %v2034_v58 }
 0x2ea   :  { %2036 = vmatprep.subr.bf16.mxu0 %v2121_v1 }
 0x2ed   :  { %2038 = vmatpush3.bf16.msra.mxu0 %v2037_v62 }
 0x2ee   :  { %2039 = vmatprep.subr.bf16.mxu0 %v2121_v1 }
 0x2f1   :  { %2041 = vmatpush3.bf16.msra.mxu0 %v2040_v2 }
 0x2f2   :  { %2042 = vmatprep.subr.bf16.mxu0 %v2121_v1 }
 0x2f5   :  { %2044 = vmatpush3.bf16.msra.mxu0 %v2043_v5  ;;  %v2090_v5 = vld [vmem:[%s2742_s16 + $0x88] sm:$0xff]  }
 0x2f6   :  { %1911 = vmatprep.subr.bf16.mxu0 %v2088_v4 }
 0x3ab   :  { %v484_v6 = vpop.f32.mrb[4].mxu0 }
 0x3ac   :  { %v1831_v9 = vpop.f32.mrb[5].mxu0  ;;  %1865 = vmatmul.mubr.f32.vlgmr.msra.gmra.mrb[6].mxu0 %v484_v6  ;;  %v2092_v6 = vld [vmem:[%s2742_s16 + $0x90] sm:$0xff]  }
 0x3ad   :  { %1912 = vmatpush3.bf16.msra.mxu0 %v2088_v4  ;;  %v2094_v9 = vld [vmem:[%s2742_s16 + $0x98] sm:$0xff]   ;;  %v1363_v4 = vld [vmem:[%s2746_s8 + $0x10] sm:$0xff] }
 0x3ae   :  { %1913 = vmatprep.subr.bf16.mxu0 %v2090_v5 }
 0x3b1   :  { %1914 = vmatpush3.bf16.msra.mxu0 %v2090_v5 }
 0x3b2   :  { %1915 = vmatprep.subr.bf16.mxu0 %v2092_v6 }
 0x3b5   :  { %1916 = vmatpush3.bf16.msra.mxu0 %v2092_v6  ;;  %v1365_v6 = vld [vmem:[%s2746_s8 + $0x20] sm:$0xff] }
 0x3b6   :  { %1917 = vmatprep.subr.bf16.mxu0 %v2094_v9 }
 0x3b9   :  { %1918 = vmatpush3.bf16.msra.mxu0 %v2094_v9  ;;  %v1366_v9 = vld [vmem:[%s2746_s8 + $0x28] sm:$0xff] }
 0x3ba   :  { %1919 = vmatprep.subr.bf16.mxu0 %v2096_v11 }
 0x3bd   :  { %1920 = vmatpush3.bf16.msra.mxu0 %v2096_v11  ;;  %v2058_v11 = vpack.c.bf16 %v1366_v9, %v1365_v6 }
 0x47f   :  { %v570_v17 = vpop.f32.mrb[6].mxu0 }
 0x480   :  { %v575_v18 = vsel %vm574_vm5, %v570_v17, 0.0  ;;  %v584_v19 = vmul.f32 %v570_v17, %v570_v17  ;;  %v1866_v20 = vpop.f32.mrb[7].mxu0 }
 0x481   :  { %v576_v21 = vrot.slane %v575_v18, 4  ;;  %v2093_v20 = vld [vmem:[%s2742_s16 + $0x18] sm:$0xff]  }
 0x482   :  { %v585_v22 = vsel %vm574_vm5, %v584_v19, 0.0  ;;  %v2091_v19 = vld [vmem:[%s2742_s16 + $0x10] sm:$0xff]  }
 0x483   :  { %v577_v23 = vadd.f32 %v576_v21, %v575_v18  ;;  %v586_v24 = vrot.slane %v585_v22, 4  ;;  %v783_v18 = vld [vmem:[%s2741_s9 + $0x18] sm:$0xff]  ;;  %v2095_v21 = vld [vmem:[%s2742_s16 + $0x20] sm:$0xff]  }
 0x485   :  { %v578_v25 = vrot.slane %v577_v23, 2  ;;  %v587_v26 = vadd.f32 %v586_v24, %v585_v22  ;;  %v2097_v22 = vld [vmem:[%s2742_s16 + $0x28] sm:$0xff]   ;;  %v2099_v24 = vld [vmem:[%s2742_s16 + $0x30] sm:$0xff]  }
 0x487   :  { %v579_v28 = vadd.f32 %v578_v25, %v577_v23  ;;  %v588_v37 = vrot.slane %v587_v26, 2  ;;  %v2098_v23 = vld [vmem:[%s2742_s16 + $0xa8] sm:$0xff]   ;;  %v2100_v25 = vld [vmem:[%s2742_s16 + $0xb0] sm:$0xff]  }
 0x488   :  { %1921 = vmatprep.subr.bf16.mxu0 %v2098_v23 }
 0x489   :  { %v580_v38 = vrot.slane %v579_v28, 1  ;;  %v589_v39 = vadd.f32 %v588_v37, %v587_v26  ;;  %1922 = vmatpush3.bf16.msra.mxu0 %v2098_v23  ;;  %v2101_v26 = vld [vmem:[%s2742_s16 + $0x38] sm:$0xff]   ;;  %v2103_v37 = vld [vmem:[%s2742_s16 + $0x40] sm:$0xff]  }
 0x48a   :  { %1923 = vmatprep.subr.bf16.mxu0 %v2100_v25 }
 0x48b   :  { %v581_v40 = vadd.f32 %v580_v38, %v579_v28  ;;  %v590_v41 = vrot.slane %v589_v39, 1  ;;  %v2102_v28 = vld [vmem:[%s2742_s16 + $0xb8] sm:$0xff]   ;;  %v2124_v38 = vmov 0  }
 0x48c   :  { %2080 = vset.pattern.permute.xlu1 %v2124_v38  ;;  %2079 = vset.pattern.permute.xlu0 %v2124_v38 }
 0x48d   :  { %v583_v42 = vmul.f32 0.5, %v581_v40  ;;  %v591_v43 = vadd.f32 %v590_v41, %v589_v39  ;;  %1924 = vmatpush3.bf16.msra.mxu0 %v2100_v25  ;;  %v1183_v39 = vld [vmem:[%s2743_s19 + $0x10] sm:$0xff]  ;;  %v1181_v40 = vld [vmem:[%s2743_s19] sm:$0xff]  ;;  %v1376_v25 = vld [vmem:[%s2746_s8 + $0x78] sm:$0xff] }
 0x48e   :  { %1925 = vmatprep.subr.bf16.mxu0 %v2102_v28  ;;  %1197 = vperm.xlu1 %2080, %v1183_v39   ;;  %v1306_v41 = vld [vmem:[%s2744_s20] sm:$0xff] }
 0x48f   :  { %v592_v44 = vmul.f32 0.5, %v591_v43  ;;  %v593_v45 = vmul.f32 %v583_v42, %v583_v42  ;;  %v597_v49 = vsub.f32 %v570_v17, %v583_v42  ;;  %v2089_v17 = vld [vmem:[%s2742_s16 + $0x8] sm:$0xff]   ;;  %1187 = vperm.xlu0 %2079, %v1181_v40   ;;  %v1184_v43 = vld [vmem:[%s2743_s19 + $0x18] sm:$0xff] }
 0x490   :  { %v1182_v42 = vld [vmem:[%s2743_s19 + $0x8] sm:$0xff] }
 0x491   :  { %v594_v46 = vsub.f32 %v592_v44, %v593_v45  ;;  %v604_v51 = vmul.f32 %v1592_v50, %v597_v49  ;;  %1926 = vmatpush3.bf16.msra.mxu0 %v2102_v28  ;;  %v1307_v44 = vld [vmem:[%s2744_s20 + $0x8] sm:$0xff]  ;;  %v1309_v45 = vld [vmem:[%s2744_s20 + $0x18] sm:$0xff]  ;;  %v886_v49 = vsub.f32 %v2388_v33, %v2371_v29 }
 0x492   :  { %2051 = vmatprep.subr.bf16.mxu0 %v2121_v1  ;;  %1312 = vperm.xlu1 %2080, %v1306_v41  }
 0x493   :  { %v595_v47 = vmax.f32 %v594_v46, 0.0  ;;  %1192 = vperm.xlu0 %2079, %v1182_v42   ;;  %v1308_v46 = vld [vmem:[%s2744_s20 + $0x10] sm:$0xff] }
 0x495   :  { %v605_v48 = vadd.f32 1e-05, %v595_v47  ;;  %v887_v47 = vsub.f32 %v2390_v34, %v2376_v30 }
 0x496   :  { %1202 = vperm.xlu1 %2080, %v1184_v43  }
 0x497   :  { %2113 = vrsqrt.f32 %v605_v48  ;;  %1317 = vperm.xlu0 %2079, %v1307_v44  }
 0x49a   :  { %1327 = vperm.xlu1 %2080, %v1309_v45  }
 0x49b   :  { %1322 = vperm.xlu0 %2079, %v1308_v46  }
 0x4a1   :  { %v2114_v52 = vpop.eup %2113 }
 0x4a2   :  { %v607_v54 = vmul.f32 %v2114_v52, %v604_v51 }
 0x4a4   :  { %v615_v55 = vadd.f32 %v1593_v53, %v607_v54  ;;  %v889_v54 = vsub.f32 %v2394_v36, %v2386_v32 }
 0x4a6   :  { %v616_v56 = vmax.f32 %v615_v55, 0.0 }
 0x4a8   :  { %1876 = vmatmul.mubr.msk.f32.vlgmr.msra.gmra.mrb[4].mxu1 %vm414_vm4, %v616_v56 }
 0x4a9   :  { %1879 = vmatpush3.msra.mxu1 %v2343_v59  ;;  %1880 = vmatprep.mubr.msk.f32.mxu1 %vm2122_vm1, %v2123_v27  ;;  %v780_v59 = vld [vmem:[%s2741_s9] sm:$0xff] }
 0x57b   :  { %v697_v58 = vpop.f32.mrb[4].mxu1 }
 0x57c   :  { %v698_v60 = vadd.f32 %v1594_v57, %v697_v58  ;;  %v1877_v61 = vpop.f32.mrb[5].mxu1  ;;  %v888_v57 = vsub.f32 %v2392_v35, %v2381_v31 }
 0x57d   :  { %v2107_v61 = vld [vmem:[%s2742_s16 + $0x60] sm:$0xff]  }
 0x57e   :  { %v701_v62 = vsub.f32 0.0, %v698_v60  ;;  %v2104_v60 = vld [vmem:[%s2742_s16 + $0x48] sm:$0xff]  }
 0x580   :  { %v702_v63 = vmul.f32 1.442695, %v701_v62  ;;  %v2108_v62 = vld [vmem:[%s2742_s16 + $0x68] sm:$0xff]  }
 0x582   :  { %2115 = vpow2.f32 %v702_v63  ;;  %v2109_v63 = vld [vmem:[%s2742_s16 + $0x70] sm:$0xff]  }
 0x58c   :  { %v2116_v0 = vpop.eup %2115 }
 0x58d   :  { %v704_v2 = vadd.f32 1.0, %v2116_v0  ;;  %v2110_v0 = vld [vmem:[%s2742_s16 + $0x78] sm:$0xff]  }
 0x58f   :  { %2117 = vrcp.f32 %v704_v2  ;;  %v1361_v2 = vld [vmem:[%s2746_s8] sm:$0xff] }
 0x599   :  { %v2118_v3 = vpop.eup %2117 }
 0x59a   :  { %1881 = vmatmul.mubr.msk.f32.vlgmr.msra.gmra.mrb[6].mxu1 %vm293_vm3, %v2118_v3  ;;  %v1362_v3 = vld [vmem:[%s2746_s8 + $0x8] sm:$0xff] }
 0x59b   :  { %1885 = vmatprep.mubr.msk.f32.mxu1 %vm784_vm6, %v780_v59  ;;  %v2052_v59 = vpack.c.bf16 %v1362_v3, %v1361_v2 }
 0x66d   :  { %v776_v13 = vpop.f32.mrb[6].mxu1 }
 0x66e   :  { %v1882_v15 = vpop.f32.mrb[7].mxu1  ;;  %1883 = vmatprep.subr.msk.mxu1 %vm797_vm7, %v776_v13 }
 0x66f   :  { %1884 = vmatpush3.msk.msra.mxu1 %vm797_vm7, %v776_v13  ;;  %v1368_v13 = vld [vmem:[%s2746_s8 + $0x38] sm:$0xff]  ;;  %v1369_v15 = vld [vmem:[%s2746_s8 + $0x40] sm:$0xff] }
 0x670   :  { %1886 = vmatmul.mubr.msk.f32.vlgmr.msra.gmra.mrb[8].mxu1 %vm784_vm6, %v781_v14  ;;  %1891 = vmatprep.subr.bf16.mxu1 %v2087_v12 }
 0x671   :  { %1888 = vmatprep.mubr.msk.f32.mxu1 %vm784_vm6, %v782_v16  ;;  %1892 = vmatpush3.bf16.msra.mxu1 %v2087_v12  ;;  %v1367_v12 = vld [vmem:[%s2746_s8 + $0x30] sm:$0xff]  ;;  %v1370_v16 = vld [vmem:[%s2746_s8 + $0x48] sm:$0xff] }
 0x672   :  { %1893 = vmatprep.subr.bf16.mxu1 %v2089_v17  ;;  %v2061_v14 = vpack.c.bf16 %v1368_v13, %v1367_v12 }
 0x674   :  { %1889 = vmatmul.mubr.msk.f32.gmra.mrb[10].mxu1 %vm784_vm6, %v783_v18  ;;  %v1371_v18 = vld [vmem:[%s2746_s8 + $0x50] sm:$0xff] }
 0x675   :  { %1894 = vmatpush3.bf16.msra.mxu1 %v2089_v17  ;;  %v2064_v17 = vpack.c.bf16 %v1370_v16, %v1369_v15 }
 0x676   :  { %1895 = vmatprep.subr.bf16.mxu1 %v2091_v19 }
 0x679   :  { %1896 = vmatpush3.bf16.msra.mxu1 %v2091_v19  ;;  %v1372_v19 = vld [vmem:[%s2746_s8 + $0x58] sm:$0xff] }
 0x67a   :  { %1897 = vmatprep.subr.bf16.mxu1 %v2093_v20 }
 0x67d   :  { %1898 = vmatpush3.bf16.msra.mxu1 %v2093_v20  ;;  %v2067_v20 = vpack.c.bf16 %v1372_v19, %v1371_v18 }
 0x67e   :  { %1899 = vmatprep.subr.bf16.mxu1 %v2095_v21 }
 0x681   :  { %1900 = vmatpush3.bf16.msra.mxu1 %v2095_v21  ;;  %v1373_v21 = vld [vmem:[%s2746_s8 + $0x60] sm:$0xff] }
 0x682   :  { %1901 = vmatprep.subr.bf16.mxu1 %v2097_v22 }
 0x685   :  { %1902 = vmatpush3.bf16.msra.mxu1 %v2097_v22  ;;  %v1374_v22 = vld [vmem:[%s2746_s8 + $0x68] sm:$0xff] }
 0x686   :  { %1903 = vmatprep.subr.bf16.mxu1 %v2099_v24  ;;  %v2070_v23 = vpack.c.bf16 %v1374_v22, %v1373_v21 }
 0x689   :  { %1904 = vmatpush3.bf16.msra.mxu1 %v2099_v24  ;;  %v1375_v24 = vld [vmem:[%s2746_s8 + $0x70] sm:$0xff] }
 0x68a   :  { %1905 = vmatprep.subr.bf16.mxu1 %v2101_v26 }
 0x68d   :  { %1906 = vmatpush3.bf16.msra.mxu1 %v2101_v26  ;;  %v2073_v26 = vpack.c.bf16 %v1376_v25, %v1375_v24 }
 0x68e   :  { %1931 = vmatprep.subr.bf16.mxu1 %v2103_v37 }
 0x743   :  { %v1887_v48 = vpop.f32.mrb[8].mxu1 }
 0x744   :  { %v891_v50 = vmul.f32 %v1887_v48, %v887_v47  ;;  %v867_v51 = vpop.f32.mrb[9].mxu1 }
 0x745   :  { %v890_v52 = vmul.f32 %v886_v49, %v867_v51 }
 0x746   :  { %v895_v53 = vadd.f32 %v891_v50, %v2376_v30 }
 0x747   :  { %v894_v55 = vadd.f32 %v890_v52, %v2371_v29  ;;  %v1890_v56 = vpop.f32.mrb[10].mxu1 }
 0x748   :  { %899 = vst [vmem:[%s2745_s22 + $0x8] sm:$0xff] %v895_v53  ;;  %v893_v34 = vmul.f32 %v1890_v56, %v889_v54  ;;  %v877_v33 = vpop.f32.mrb[11].mxu1 }
 0x749   :  { %898 = vst [vmem:[%s2745_s22] sm:$0xff] %v894_v55  ;;  %v892_v30 = vmul.f32 %v888_v57, %v877_v33  ;;  %v902_v58 = vpack.c.bf16 %v895_v53, %v894_v55  ;;  %v1188_v57 = vpop.permute.xlu0 %1187 }
 0x74a   :  { %v897_v36 = vadd.f32 %v893_v34, %v2386_v32  ;;  %v2106_v32 = vld [vmem:[%s2742_s16 + $0x58] sm:$0xff]   ;;  %v1198_v34 = vpop.permute.xlu1 %1197 }
 0x74b   :  { %v896_v29 = vadd.f32 %v892_v30, %v2381_v31  ;;  %1907 = vmatprep.mubr.bf16.mxu1 %v902_v58  ;;  %1927 = vmatprep.mubr.bf16.mxu0 %v902_v58  ;;  %v2105_v31 = vld [vmem:[%s2742_s16 + $0x50] sm:$0xff]  }
 0x74c   :  { %901 = vst [vmem:[%s2745_s22 + $0x18] sm:$0xff] %v897_v36 }
 0x74d   :  { %900 = vst [vmem:[%s2745_s22 + $0x10] sm:$0xff] %v896_v29  ;;  %v903_v35 = vpack.c.bf16 %v897_v36, %v896_v29  ;;  %v1193_v33 = vpop.permute.xlu0 %1192 }
 0x74e   :  { %v1313_v30 = vpop.permute.xlu1 %1312 }
 0x74f   :  { %1908 = vmatmul.mubr.bf16.vlgmr.msra.gmra.mrb[12].mxu1 %v903_v35  ;;  %1928 = vmatmul.mubr.bf16.vlgmr.msra.gmra.mrb[8].mxu0 %v903_v35 }
 0x750   :  { %1932 = vmatpush3.bf16.msra.mxu1 %v2103_v37  ;;  %1947 = vmatprep.mubr.bf16.mxu1 %v902_v58 }
 0x751   :  { %1933 = vmatprep.subr.bf16.mxu1 %v2104_v60  ;;  %1983 = vmatprep.mubr.msk.f32.mxu0 %vm2122_vm1, %v2123_v27  ;;  %v1318_v58 = vpop.permute.xlu0 %1317 }
 0x752   :  { %2053 = vmatpush3.bf16.msra.mxu0 %v2052_v59  ;;  %v1203_v36 = vpop.permute.xlu1 %1202 }
 0x753   :  { %2054 = vmatprep.subr.bf16.mxu0 %v2121_v1 }
 0x754   :  { %1934 = vmatpush3.bf16.msra.mxu1 %v2104_v60 }
 0x755   :  { %1935 = vmatprep.subr.bf16.mxu1 %v2105_v31 }
 0x758   :  { %1936 = vmatpush3.bf16.msra.mxu1 %v2105_v31  ;;  %v1328_v31 = vpop.permute.xlu1 %1327 }
 0x759   :  { %1937 = vmatprep.subr.bf16.mxu1 %v2106_v32 }
 0x75c   :  { %1938 = vmatpush3.bf16.msra.mxu1 %v2106_v32 }
 0x75d   :  { %1939 = vmatprep.subr.bf16.mxu1 %v2107_v61 }
 0x760   :  { %1940 = vmatpush3.bf16.msra.mxu1 %v2107_v61 }
 0x761   :  { %1941 = vmatprep.subr.bf16.mxu1 %v2108_v62 }
 0x764   :  { %1942 = vmatpush3.bf16.msra.mxu1 %v2108_v62 }
 0x765   :  { %1943 = vmatprep.subr.bf16.mxu1 %v2109_v63 }
 0x768   :  { %1944 = vmatpush3.bf16.msra.mxu1 %v2109_v63 }
 0x769   :  { %1945 = vmatprep.subr.bf16.mxu1 %v2110_v0 }
 0x76c   :  { %1946 = vmatpush3.bf16.msra.mxu1 %v2110_v0 }
 0x76d   :  { %1986 = vmatprep.subr.mxu1 %v2123_v27 }
 0x76f   :  { %1948 = vmatmul.mubr.bf16.vlgmr.msra.gmra.mrb[16].mxu1 %v903_v35  ;;  %v1323_v35 = vpop.permute.xlu0 %1322 }
 0x770   :  { %1988 = vmatprep.mubr.msk.f32.mxu1 %vm2122_vm1, %v2123_v27  ;;  %v1364_v27 = vld [vmem:[%s2746_s8 + $0x18] sm:$0xff] }
 0x771   :  { %v2055_v5 = vpack.c.bf16 %v1364_v27, %v1363_v4 }
 0x773   :  { %2056 = vmatpush3.bf16.msra.mxu0 %v2055_v5 }
 0x774   :  { %2057 = vmatprep.subr.bf16.mxu0 %v2121_v1 }
 0x777   :  { %2059 = vmatpush3.bf16.msra.mxu0 %v2058_v11 }
 0x778   :  { %2060 = vmatprep.subr.bf16.mxu0 %v2121_v1 }
 0x77b   :  { %2062 = vmatpush3.bf16.msra.mxu0 %v2061_v14 }
 0x77c   :  { %2063 = vmatprep.subr.bf16.mxu0 %v2121_v1 }
 0x77f   :  { %2065 = vmatpush3.bf16.msra.mxu0 %v2064_v17 }
 0x780   :  { %2066 = vmatprep.subr.bf16.mxu0 %v2121_v1 }
 0x783   :  { %2068 = vmatpush3.bf16.msra.mxu0 %v2067_v20 }
 0x784   :  { %2069 = vmatprep.subr.bf16.mxu0 %v2121_v1 }
 0x787   :  { %2071 = vmatpush3.bf16.msra.mxu0 %v2070_v23 }
 0x788   :  { %2072 = vmatprep.subr.bf16.mxu0 %v2121_v1 }
 0x78b   :  { %2074 = vmatpush3.bf16.msra.mxu0 %v2073_v26 }
 0x822   :  { %v1909_v28 = vpop.f32.mrb[12].mxu1  ;;  %v1929_v37 = vpop.f32.mrb[8].mxu0 }
 0x823   :  { %v1002_v38 = vpop.f32.mrb[13].mxu1  ;;  %v1133_v39 = vpop.f32.mrb[9].mxu0  ;;  %v1155_v42 = vrot.slane %v1909_v28, 7  ;;  %v1172_v43 = vrot.slane %v1929_v37, 1 }
 0x824   :  { %v1910_v40 = vpop.f32.mrb[14].mxu1  ;;  %v1930_v41 = vpop.f32.mrb[10].mxu0  ;;  %v1169_v48 = vrot.slane %v1133_v39, 1  ;;  %v1152_v51 = vrot.slane %v1002_v38, 7 }
 0x825   :  { %v1157_v44 = vrot.slane %v1910_v40, 7  ;;  %v1174_v45 = vrot.slane %v1930_v41, 1  ;;  %v1005_v46 = vpop.f32.mrb[15].mxu1  ;;  %v1136_v47 = vpop.f32.mrb[11].mxu0 }
 0x826   :  { %v1153_v49 = vrot.slane %v1005_v46, 7  ;;  %v1170_v50 = vrot.slane %v1136_v47, 1  ;;  %v1163_v29 = vsel %vm195_vm2, 0.0, %v1152_v51 }
 0x827   :  { %v1175_v1 = vsel %vm1168_vm8, %v1172_v43, %v1174_v45  ;;  %v1158_v52 = vsel %vm195_vm2, %v1155_v42, %v1157_v44  ;;  %v1180_v32 = vsel %vm1168_vm8, %v1174_v45, 0.0  ;;  %v1205_v62 = vmul.f32 %v1188_v57, %v1163_v29 }
 0x828   :  { %v1171_v53 = vsel %vm1168_vm8, %v1169_v48, %v1170_v50  ;;  %v1173_v54 = vsel %vm1168_vm8, %v1170_v50, %v1172_v43  ;;  %v1156_v55 = vsel %vm195_vm2, %v1153_v49, %v1155_v42  ;;  %v1154_v56 = vsel %vm195_vm2, %v1152_v51, %v1153_v49  ;;  %v1456_v50 = vld [vmem:[%s2747_s7] sm:$0xff] }
 0x829   :  { %v1207_v60 = vmul.f32 %v1198_v34, %v1156_v55  ;;  %v1332_v63 = vmul.f32 %v1323_v35, %v1175_v1  ;;  %v1208_v3 = vmul.f32 %v1203_v36, %v1158_v52  ;;  %v1330_v4 = vmul.f32 %v1313_v30, %v1171_v53  ;;  %1987 = vmatpush3.msra.mxu1 %v1456_v50  ;;  %v1659_v36 = vld [vmem:[%s2748_s17] ss:$0 sm:$0xff] }
 0x82a   :  { %v1206_v5 = vmul.f32 %v1193_v33, %v1154_v56  ;;  %v1333_v6 = vmul.f32 %v1328_v31, %v1180_v32  ;;  %v1331_v15 = vmul.f32 %v1318_v58, %v1173_v54 }
 0x842   :  { %v1949_v61 = vpop.f32.mrb[16].mxu1 }
 0x843   :  { %v1300_v0 = vadd.f32 %v1949_v61, %v1207_v60  ;;  %v1291_v2 = vpop.f32.mrb[17].mxu1 }
 0x844   :  { %v1292_v59 = vadd.f32 %v1291_v2, %v1205_v62  ;;  %v1950_v27 = vpop.f32.mrb[18].mxu1 }
 0x845   :  { %v1336_v9 = vadd.f32 %v1332_v63, %v1300_v0  ;;  %v1303_v11 = vadd.f32 %v1950_v27, %v1208_v3  ;;  %v1294_v12 = vpop.f32.mrb[19].mxu1 }
 0x846   :  { %v1334_v13 = vadd.f32 %v1330_v4, %v1292_v59  ;;  %v1295_v14 = vadd.f32 %v1294_v12, %v1206_v5 }
 0x847   :  { %v1337_v16 = vadd.f32 %v1333_v6, %v1303_v11  ;;  %v1349_v21 = vmul.f32 %v1336_v9, %v1336_v9 }
 0x848   :  { %v1335_v17 = vadd.f32 %v1331_v15, %v1295_v14  ;;  %v1347_v18 = vmul.f32 %v1334_v13, %v1334_v13 }
 0x849   :  { %v1350_v24 = vmul.f32 %v1337_v16, %v1337_v16 }
 0x84a   :  { %v1338_v19 = vadd.f32 %v1335_v17, %v1334_v13  ;;  %v1348_v20 = vmul.f32 %v1335_v17, %v1335_v17 }
 0x84c   :  { %v1339_v22 = vadd.f32 %v1338_v19, %v1336_v9  ;;  %v1351_v23 = vadd.f32 %v1348_v20, %v1347_v18 }
 0x84e   :  { %v1340_v25 = vadd.f32 %v1339_v22, %v1337_v16  ;;  %v1352_v26 = vadd.f32 %v1351_v23, %v1349_v21 }
 0x850   :  { %v1341_v28 = vrot.slane %v1340_v25, 4  ;;  %v1353_v37 = vadd.f32 %v1352_v26, %v1350_v24 }
 0x852   :  { %v1342_v38 = vadd.f32 %v1341_v28, %v1340_v25  ;;  %v1354_v39 = vrot.slane %v1353_v37, 4 }
 0x854   :  { %v1343_v40 = vrot.slane %v1342_v38, 2  ;;  %v1355_v41 = vadd.f32 %v1354_v39, %v1353_v37 }
 0x856   :  { %v1344_v42 = vadd.f32 %v1343_v40, %v1342_v38  ;;  %v1356_v43 = vrot.slane %v1355_v41, 2 }
 0x858   :  { %v1345_v44 = vrot.slane %v1344_v42, 1  ;;  %v1357_v45 = vadd.f32 %v1356_v43, %v1355_v41 }
 0x85a   :  { %v1358_v46 = vrot.slane %v1357_v45, 1  ;;  %v1346_v47 = vadd.f32 %v1345_v44, %v1344_v42 }
 0x85c   :  { %v1359_v48 = vadd.f32 %v1358_v46, %v1357_v45 }
 0x85e   :  { %v1360_v49 = vsel %vm195_vm2, %v1346_v47, %v1359_v48 }
 0x85f   :  { %1984 = vmatmul.mubr.f32.vlgmr.msra.gmra.mrb[12].mxu0 %v1360_v49 }
 0x932   :  { %v1443_v51 = vpop.f32.mrb[12].mxu0 }
 0x933   :  { %v1447_v1 = vmul.f32 %v1443_v51, %v1443_v51  ;;  %v1985_v52 = vpop.f32.mrb[13].mxu0 }
 0x935   :  { %v1449_v53 = vrot.slane %v1447_v1, 7 }
 0x937   :  { %v1451_v54 = vsub.f32 %v1443_v51, %v1449_v53 }
 0x939   :  { %v1452_v55 = vmax.f32 %v1451_v54, 0.0 }
 0x93b   :  { %v1453_v56 = vadd.f32 1e-05, %v1452_v55 }
 0x93d   :  { %2119 = vrsqrt.f32 %v1453_v56 }
 0x947   :  { %v2120_v57 = vpop.eup %2119 }
 0x948   :  { %v1455_v34 = vsel %vm195_vm2, %v1443_v51, %v2120_v57 }
 0x949   :  { %1989 = vmatmul.mubr.msk.f32.vlgmr.msra.gmra.mrb[20].mxu1 %vm293_vm3, %v1455_v34 }
 0xa1c   :  { %v1526_v33 = vpop.f32.mrb[20].mxu1 }
 0xa1d   :  { %v1534_v30 = vrot.slane %v1526_v33, %v370_v8  ;;  %v1990_v58 = vpop.f32.mrb[21].mxu1  ;;  %v1552_v32 = vrot.slane %v1526_v33, %v388_v10  ;;  %v1660_v8 = vld [vmem:[%s2749_s18] ss:$0 sm:$0xff] }
 0xa1f   :  { %v1535_v29 = vsub.f32 %v1334_v13, %v1534_v30  ;;  %v1536_v35 = vsub.f32 %v1335_v17, %v1534_v30  ;;  %v1537_v60 = vsub.f32 %v1336_v9, %v1534_v30  ;;  %v1538_v31 = vsub.f32 %v1337_v16, %v1534_v30 }
 0xa21   :  { %v1545_v61 = vmul.f32 %v1659_v36, %v1535_v29  ;;  %v1546_v62 = vmul.f32 %v1659_v36, %v1536_v35  ;;  %v1547_v63 = vmul.f32 %v1659_v36, %v1537_v60  ;;  %v1548_v0 = vmul.f32 %v1659_v36, %v1538_v31 }
 0xa23   :  { %v1553_v2 = vmul.f32 %v1552_v32, %v1545_v61  ;;  %v1554_v3 = vmul.f32 %v1552_v32, %v1546_v62  ;;  %v1555_v59 = vmul.f32 %v1552_v32, %v1547_v63  ;;  %v1556_v4 = vmul.f32 %v1552_v32, %v1548_v0 }
 0xa25   :  { %v1564_v27 = vadd.f32 %v1660_v8, %v1553_v2  ;;  %v1565_v5 = vadd.f32 %v1660_v8, %v1554_v3  ;;  %v1566_v6 = vadd.f32 %v1660_v8, %v1555_v59  ;;  %v1567_v9 = vadd.f32 %v1660_v8, %v1556_v4 }
 0xa27   :  { %1568 = vst [vmem:[%s2750_s21] sm:$0xff] %v1564_v27  ;;  %1569 = vst [vmem:[%s2750_s21 + $0x8] sm:$0xff] %v1565_v5 }
 0xa28   :  { %1570 = vst [vmem:[%s2750_s21 + $0x10] sm:$0xff] %v1566_v6  ;;  %1571 = vst [vmem:[%s2750_s21 + $0x18] sm:$0xff] %v1567_v9 }

</bundles_post_ra>
